<compile_context>
chip_gen: v5e
topology: v5e:2x2
jax: 0.10.0
libtpu: 0.0.40
codegen_flags: <defaults>
</compile_context>

<pallas_src>
import jax
import jax.numpy as jnp
from jax import lax
from jax.experimental import pallas as pl
from jax.experimental.pallas import tpu as pltpu

EPS = 1e-5


def _sigmoid(z):
    return 1.0 / (1.0 + jnp.exp(-z))


def _fused_kernel(x14_ref, x11_ref, x11s_ref, x5s_ref, p1_ref, p2_ref, out_ref):
    N, C1, HW = x11_ref.shape
    S = x11s_ref.shape[2]                 # Ho*Wo
    C2 = p2_ref.shape[0]
    Cse = x14_ref.shape[1]
    NHW = N * HW
    NS = N * S

    # ---- unpack the packed parameter slabs (static lane slices) ---------------
    p1 = p1_ref[...]                       # [C1, C1 + Cse + 3]
    w6 = p1[:, :C1]                        # conv2d6 weight  [C1, C1]
    w5 = p1[:, C1:C1 + Cse]                # conv2d5 weight  [C1, Cse]
    b5 = p1[:, C1 + Cse:C1 + Cse + 1]      # conv2d5 bias    [C1, 1]
    g4 = p1[:, C1 + Cse + 1:C1 + Cse + 2]  # bn4 gamma       [C1, 1]
    bt4 = p1[:, C1 + Cse + 2:C1 + Cse + 3] # bn4 beta        [C1, 1]

    p2 = p2_ref[...]                       # [C2, C1 + 2]
    w7 = p2[:, :C1]                        # conv2d7 weight  [C2, C1]
    g5 = p2[:, C1:C1 + 1]                  # bn5 gamma       [C2, 1]
    bt5 = p2[:, C1 + 1:C1 + 2]             # bn5 beta        [C2, 1]

    x14 = x14_ref[...]                     # [N, Cse]

    # ---- SE gate (VPU) + pass 1: batched Gram / row-sum of x17 ----------------
    gate_cols = []
    x17_blocks = []
    for n in range(N):
        # conv2d5 (1x1 on a 1x1 map) + sigmoid: [C1,Cse]*[1,Cse] -> lane reduce
        g_n = _sigmoid(jnp.sum(w5 * x14[n:n + 1, :], axis=-1, keepdims=True) + b5)
        gate_cols.append(g_n)                                    # [C1, 1]
        x17_blocks.append(g_n * x11_ref[n])                      # [C1, HW]

    X17 = x17_blocks[0] if N == 1 else jnp.concatenate(x17_blocks, axis=-1)  # [C1, NHW]
    # Ones-row augmentation: one MXU call yields both G and the row-sum s17.
    Xa = jnp.concatenate([X17, jnp.ones((1, NHW), jnp.float32)], axis=0)     # [C1+1, NHW]
    Gaug = lax.dot_general(Xa, Xa, (((1,), (1,)), ((), ())),
                           preferred_element_type=jnp.float32)               # [C1+1, C1+1]
    G = Gaug[:C1, :C1]                                                       # sum x17 x17^T
    s17 = Gaug[:C1, C1:C1 + 1]                                               # sum x17

    # ---- BN4 batch statistics without materializing x18 = w6 @ x17 ------------
    inv_nhw = 1.0 / NHW
    mean4 = jnp.dot(w6, s17, preferred_element_type=jnp.float32) * inv_nhw   # [C1, 1]
    w6G = jnp.dot(w6, G, preferred_element_type=jnp.float32)                 # [C1, C1]
    ex2_4 = jnp.sum(w6G * w6, axis=-1, keepdims=True) * inv_nhw              # [C1, 1]
    var4 = ex2_4 - mean4 * mean4
    a4 = g4 * lax.rsqrt(var4 + EPS)
    c4 = bt4 - mean4 * a4
    w6p = a4 * w6                           # BN4 scale folded into conv2d6 weight

    # ---- pass 2 (stride-2 positions only): x21 -> BN5 stats -> output ---------
    x17s_blocks = [gate_cols[n] * x11s_ref[n] for n in range(N)]             # [C1, S]
    X17s = x17s_blocks[0] if N == 1 else jnp.concatenate(x17s_blocks, axis=-1)
    X5s = x5s_ref[0] if N == 1 else jnp.concatenate(
        [x5s_ref[n] for n in range(N)], axis=-1)                             # [C1, NS]
    X21 = jnp.maximum(
        X5s + jnp.dot(w6p, X17s, preferred_element_type=jnp.float32) + c4, 0.0)

    # BN5 statistics via the same Gram trick (no x22 materialization for stats).
    X21a = jnp.concatenate([X21, jnp.ones((1, NS), jnp.float32)], axis=0)    # [C1+1, NS]
    G21aug = lax.dot_general(X21a, X21a, (((1,), (1,)), ((), ())),
                             preferred_element_type=jnp.float32)             # [C1+1, C1+1]
    G21 = G21aug[:C1, :C1]
    s21 = G21aug[:C1, C1:C1 + 1]

    inv_ns = 1.0 / NS
    mean5 = jnp.dot(w7, s21, preferred_element_type=jnp.float32) * inv_ns    # [C2, 1]
    w7G = jnp.dot(w7, G21, preferred_element_type=jnp.float32)               # [C2, C1]
    ex2_5 = jnp.sum(w7G * w7, axis=-1, keepdims=True) * inv_ns               # [C2, 1]
    var5 = ex2_5 - mean5 * mean5
    a5 = g5 * lax.rsqrt(var5 + EPS)
    c5 = bt5 - mean5 * a5
    w7p = a5 * w7                           # BN5 scale folded into conv2d7 weight

    X23 = jnp.dot(w7p, X21, preferred_element_type=jnp.float32) + c5         # [C2, NS]
    for n in range(N):
        out_ref[n] = X23[:, n * S:(n + 1) * S]


def forward(x14, x11, x5, params):
    """x14: [N,8,1,1], x11/x5: [N,48,H,W] (NCHW) -> [N,104,ceil(H/2),ceil(W/2)] (NCHW)."""
    N, Cse, _, _ = x14.shape
    _, C1, H, W = x11.shape
    Ho, Wo = (H + 1) // 2, (W + 1) // 2
    C2 = params["p2"].shape[0]

    x14_f = x14.reshape(N, Cse)
    x11_f = x11.reshape(N, C1, H * W)                        # free reshape (contiguous)
    # TODO(synk): the two strided residual slices below are small XLA gather
    # kernels before the pallas_call; deriving them in-kernel from the resident
    # x11/x5 blocks needs a lane deinterleave that costs more than it saves at
    # these sizes, so the extra ~25% residual HBM traffic is accepted.
    x11_s = x11[:, :, ::2, ::2].reshape(N, C1, Ho * Wo)
    x5_s = x5[:, :, ::2, ::2].reshape(N, C1, Ho * Wo)

    vmem = pl.BlockSpec(memory_space=pltpu.MemorySpace.VMEM)
    out = pl.pallas_call(
        _fused_kernel,
        out_shape=jax.ShapeDtypeStruct((N, C2, Ho * Wo), jnp.float32),
        in_specs=[vmem] * 6,
        out_specs=vmem,
    )(x14_f, x11_f, x11_s, x5_s, params["p1"], params["p2"])

    return out.reshape(N, C2, Ho, Wo)   # already NCHW -- no transpose needed


def init_params(key):
    """Deterministic synthetic parameters (shapes from the module __init__),
    packed offline into two dense slabs so the kernel takes only 6 operands."""
    ks = jax.random.split(key, 8)
    raw = dict(
        w5_oi=0.2 * jax.random.normal(ks[0], (48, 8), jnp.float32),    # conv2d5 weight
        b5=0.1 * jax.random.normal(ks[1], (48,), jnp.float32),         # conv2d5 bias
        w6_oi=0.1 * jax.random.normal(ks[2], (48, 48), jnp.float32),   # conv2d6 weight
        w7_oi=0.1 * jax.random.normal(ks[3], (104, 48), jnp.float32),  # conv2d7 weight
        g4=1.0 + 0.1 * jax.random.normal(ks[4], (48,), jnp.float32),   # bn4 gamma
        bt4=0.1 * jax.random.normal(ks[5], (48,), jnp.float32),        # bn4 beta
        g5=1.0 + 0.1 * jax.random.normal(ks[6], (104,), jnp.float32),  # bn5 gamma
        bt5=0.1 * jax.random.normal(ks[7], (104,), jnp.float32),       # bn5 beta
    )
    p1 = jnp.concatenate([
        raw["w6_oi"],                    # [48, 48]  cols  0..47
        raw["w5_oi"],                    # [48, 8]   cols 48..55
        raw["b5"].reshape(48, 1),        #           col  56
        raw["g4"].reshape(48, 1),        #           col  57
        raw["bt4"].reshape(48, 1),       #           col  58
    ], axis=1)                           # [48, 59]
    p2 = jnp.concatenate([
        raw["w7_oi"],                    # [104, 48] cols  0..47
        raw["g5"].reshape(104, 1),       #           col  48
        raw["bt5"].reshape(104, 1),      #           col  49
    ], axis=1)                           # [104, 50]
    return raw, dict(p1=p1, p2=p2)


def ref_forward(x14, x11, x5, raw):
    """Pure-JAX NCHW reference mirroring the PyTorch module (training-mode BN)."""
    def bn(x, g, b):
        mean = x.mean(axis=(0, 2, 3), keepdims=True)
        var = jnp.mean(jnp.square(x - mean), axis=(0, 2, 3), keepdims=True)
        return (x - mean) / jnp.sqrt(var + EPS) * g[None, :, None, None] \
            + b[None, :, None, None]

    x15 = jnp.einsum('nchw,oc->nohw', x14, raw["w5_oi"]) \
        + raw["b5"][None, :, None, None]
    x16 = jax.nn.sigmoid(x15)
    x17 = x16 * x11
    x18 = jnp.einsum('nchw,oc->nohw', x17, raw["w6_oi"])
    x19 = bn(x18, raw["g4"], raw["bt4"])
    x21 = jnp.maximum(x5 + x19, 0.0)
    x22 = jnp.einsum('nchw,oc->nohw', x21[:, :, ::2, ::2], raw["w7_oi"])
    return bn(x22, raw["g5"], raw["bt5"])


if __name__ == "__main__":
    key = jax.random.PRNGKey(0)
    k0, k1, k2, k3 = jax.random.split(key, 4)
    N, H, W = 2, 16, 16
    x14 = jax.random.normal(k0, (N, 8, 1, 1), jnp.float32)
    x11 = jax.random.normal(k1, (N, 48, H, W), jnp.float32)
    x5 = jax.random.normal(k2, (N, 48, H, W), jnp.float32)
    raw, params = init_params(k3)

    fwd = jax.jit(lambda a, b, c: forward(a, b, c, params))
    out = jax.block_until_ready(fwd(x14, x11, x5))

    ref = ref_forward(x14, x11, x5, raw)
    assert out.shape == (N, 104, H // 2, W // 2), out.shape
    err = float(jnp.max(jnp.abs(out - ref)))
    if err < 2e-3:
        print("KERNEL_OK")
    else:
        print(f"MISMATCH max_abs_err={err}")
</pallas_src>

<mosaic_0001>
module attributes {stable_mosaic.version = 11 : i64} {
  func.func @_fused_kernel(%arg0: memref<2x8xf32, #tpu.memory_space<vmem>>, %arg1: memref<2x48x256xf32, #tpu.memory_space<vmem>>, %arg2: memref<2x48x64xf32, #tpu.memory_space<vmem>>, %arg3: memref<2x48x64xf32, #tpu.memory_space<vmem>>, %arg4: memref<48x59xf32, #tpu.memory_space<vmem>>, %arg5: memref<104x50xf32, #tpu.memory_space<vmem>>, %arg6: memref<2x104x64xf32, #tpu.memory_space<vmem>>) attributes {dimension_semantics = [], scalar_prefetch = 0 : i64, scratch_operands = 0 : i64, tpu.core_type = #tpu.core_type<tc>} {
    %c0 = arith.constant 0 : index
    %c0_0 = arith.constant 0 : index
    %0 = vector.load %arg4[%c0, %c0_0] : memref<48x59xf32, #tpu.memory_space<vmem>>, vector<48x59xf32>
    %1 = vector.extract_strided_slice %0 {offsets = [0, 0], sizes = [48, 48], strides = [1, 1]} : vector<48x59xf32> to vector<48x48xf32>
    %2 = vector.extract_strided_slice %0 {offsets = [0, 48], sizes = [48, 8], strides = [1, 1]} : vector<48x59xf32> to vector<48x8xf32>
    %3 = vector.extract_strided_slice %0 {offsets = [0, 56], sizes = [48, 1], strides = [1, 1]} : vector<48x59xf32> to vector<48x1xf32>
    %4 = vector.extract_strided_slice %0 {offsets = [0, 57], sizes = [48, 1], strides = [1, 1]} : vector<48x59xf32> to vector<48x1xf32>
    %5 = vector.extract_strided_slice %0 {offsets = [0, 58], sizes = [48, 1], strides = [1, 1]} : vector<48x59xf32> to vector<48x1xf32>
    %c0_1 = arith.constant 0 : index
    %c0_2 = arith.constant 0 : index
    %6 = vector.load %arg5[%c0_1, %c0_2] : memref<104x50xf32, #tpu.memory_space<vmem>>, vector<104x50xf32>
    %7 = vector.extract_strided_slice %6 {offsets = [0, 0], sizes = [104, 48], strides = [1, 1]} : vector<104x50xf32> to vector<104x48xf32>
    %8 = vector.extract_strided_slice %6 {offsets = [0, 48], sizes = [104, 1], strides = [1, 1]} : vector<104x50xf32> to vector<104x1xf32>
    %9 = vector.extract_strided_slice %6 {offsets = [0, 49], sizes = [104, 1], strides = [1, 1]} : vector<104x50xf32> to vector<104x1xf32>
    %c0_3 = arith.constant 0 : index
    %c0_4 = arith.constant 0 : index
    %10 = vector.load %arg0[%c0_3, %c0_4] : memref<2x8xf32, #tpu.memory_space<vmem>>, vector<2x8xf32>
    %11 = vector.extract_strided_slice %10 {offsets = [0, 0], sizes = [1, 8], strides = [1, 1]} : vector<2x8xf32> to vector<1x8xf32>
    %12 = vector.broadcast %11 : vector<1x8xf32> to vector<48x8xf32>
    %13 = arith.mulf %2, %12 : vector<48x8xf32>
    %cst = arith.constant dense<0.000000e+00> : vector<48xf32>
    %14 = vector.multi_reduction <add>, %13, %cst [1] : vector<48x8xf32> to vector<48xf32>
    %15 = vector.shape_cast %14 : vector<48xf32> to vector<48x1xf32>
    %16 = arith.addf %15, %3 : vector<48x1xf32>
    %cst_5 = arith.constant 0.000000e+00 : f32
    %17 = vector.broadcast %cst_5 : f32 to vector<48x1xf32>
    %18 = arith.subf %17, %16 : vector<48x1xf32>
    %19 = math.exp %18 : vector<48x1xf32>
    %cst_6 = arith.constant 1.000000e+00 : f32
    %20 = vector.broadcast %cst_6 : f32 to vector<48x1xf32>
    %21 = arith.addf %20, %19 : vector<48x1xf32>
    %cst_7 = arith.constant 1.000000e+00 : f32
    %22 = vector.broadcast %cst_7 : f32 to vector<48x1xf32>
    %23 = arith.divf %22, %21 : vector<48x1xf32>
    %c0_8 = arith.constant 0 : index
    %c0_9 = arith.constant 0 : index
    %c0_10 = arith.constant 0 : index
    %24 = vector.load %arg1[%c0_8, %c0_9, %c0_10] : memref<2x48x256xf32, #tpu.memory_space<vmem>>, vector<1x48x256xf32>
    %25 = vector.shape_cast %24 : vector<1x48x256xf32> to vector<48x256xf32>
    %26 = vector.broadcast %23 : vector<48x1xf32> to vector<48x256xf32>
    %27 = arith.mulf %26, %25 : vector<48x256xf32>
    %28 = vector.extract_strided_slice %10 {offsets = [1, 0], sizes = [1, 8], strides = [1, 1]} : vector<2x8xf32> to vector<1x8xf32>
    %29 = vector.broadcast %28 : vector<1x8xf32> to vector<48x8xf32>
    %30 = arith.mulf %2, %29 : vector<48x8xf32>
    %cst_11 = arith.constant dense<0.000000e+00> : vector<48xf32>
    %31 = vector.multi_reduction <add>, %30, %cst_11 [1] : vector<48x8xf32> to vector<48xf32>
    %32 = vector.shape_cast %31 : vector<48xf32> to vector<48x1xf32>
    %33 = arith.addf %32, %3 : vector<48x1xf32>
    %cst_12 = arith.constant 0.000000e+00 : f32
    %34 = vector.broadcast %cst_12 : f32 to vector<48x1xf32>
    %35 = arith.subf %34, %33 : vector<48x1xf32>
    %36 = math.exp %35 : vector<48x1xf32>
    %cst_13 = arith.constant 1.000000e+00 : f32
    %37 = vector.broadcast %cst_13 : f32 to vector<48x1xf32>
    %38 = arith.addf %37, %36 : vector<48x1xf32>
    %cst_14 = arith.constant 1.000000e+00 : f32
    %39 = vector.broadcast %cst_14 : f32 to vector<48x1xf32>
    %40 = arith.divf %39, %38 : vector<48x1xf32>
    %c1 = arith.constant 1 : index
    %c0_15 = arith.constant 0 : index
    %c0_16 = arith.constant 0 : index
    %41 = vector.load %arg1[%c1, %c0_15, %c0_16] : memref<2x48x256xf32, #tpu.memory_space<vmem>>, vector<1x48x256xf32>
    %42 = vector.shape_cast %41 : vector<1x48x256xf32> to vector<48x256xf32>
    %43 = vector.broadcast %40 : vector<48x1xf32> to vector<48x256xf32>
    %44 = arith.mulf %43, %42 : vector<48x256xf32>
    %45 = tpu.concatenate %27, %44 in 1 : vector<48x256xf32>, vector<48x256xf32> -> vector<48x512xf32>
    %cst_17 = arith.constant 1.000000e+00 : f32
    %46 = vector.broadcast %cst_17 : f32 to vector<1x512xf32>
    %47 = tpu.concatenate %45, %46 in 0 : vector<48x512xf32>, vector<1x512xf32> -> vector<49x512xf32>
    %cst_18 = arith.constant dense<0.000000e+00> : vector<49x49xf32>
    %48 = tpu.matmul %47, %47, %cst_18 {dimension_numbers = #tpu.dot_dimension_numbers<[1], [1], [0], [0], [0, 0, 1, 0], [], []>} : vector<49x512xf32>, vector<49x512xf32>, vector<49x49xf32> -> vector<49x49xf32>
    %49 = vector.extract_strided_slice %48 {offsets = [0, 0], sizes = [48, 48], strides = [1, 1]} : vector<49x49xf32> to vector<48x48xf32>
    %50 = vector.extract_strided_slice %48 {offsets = [0, 48], sizes = [48, 1], strides = [1, 1]} : vector<49x49xf32> to vector<48x1xf32>
    %cst_19 = arith.constant dense<0.000000e+00> : vector<48x1xf32>
    %51 = tpu.matmul %1, %50, %cst_19 {dimension_numbers = #tpu.dot_dimension_numbers<[1], [0], [0], [1], [0, 0, 1, 1], [], []>} : vector<48x48xf32>, vector<48x1xf32>, vector<48x1xf32> -> vector<48x1xf32>
    %cst_20 = arith.constant 0.001953125 : f32
    %52 = vector.broadcast %cst_20 : f32 to vector<48x1xf32>
    %53 = arith.mulf %51, %52 : vector<48x1xf32>
    %cst_21 = arith.constant dense<0.000000e+00> : vector<48x48xf32>
    %54 = tpu.matmul %1, %49, %cst_21 {dimension_numbers = #tpu.dot_dimension_numbers<[1], [0], [0], [1], [0, 0, 1, 1], [], []>} : vector<48x48xf32>, vector<48x48xf32>, vector<48x48xf32> -> vector<48x48xf32>
    %55 = arith.mulf %54, %1 : vector<48x48xf32>
    %cst_22 = arith.constant dense<0.000000e+00> : vector<48xf32>
    %56 = vector.multi_reduction <add>, %55, %cst_22 [1] : vector<48x48xf32> to vector<48xf32>
    %57 = vector.shape_cast %56 : vector<48xf32> to vector<48x1xf32>
    %cst_23 = arith.constant 0.001953125 : f32
    %58 = vector.broadcast %cst_23 : f32 to vector<48x1xf32>
    %59 = arith.mulf %57, %58 : vector<48x1xf32>
    %60 = arith.mulf %53, %53 : vector<48x1xf32>
    %61 = arith.subf %59, %60 : vector<48x1xf32>
    %cst_24 = arith.constant 9.99999974E-6 : f32
    %62 = vector.broadcast %cst_24 : f32 to vector<48x1xf32>
    %63 = arith.addf %61, %62 : vector<48x1xf32>
    %64 = math.rsqrt %63 : vector<48x1xf32>
    %65 = arith.mulf %4, %64 : vector<48x1xf32>
    %66 = arith.mulf %53, %65 : vector<48x1xf32>
    %67 = arith.subf %5, %66 : vector<48x1xf32>
    %68 = vector.broadcast %65 : vector<48x1xf32> to vector<48x48xf32>
    %69 = arith.mulf %68, %1 : vector<48x48xf32>
    %c0_25 = arith.constant 0 : index
    %c0_26 = arith.constant 0 : index
    %c0_27 = arith.constant 0 : index
    %70 = vector.load %arg2[%c0_25, %c0_26, %c0_27] : memref<2x48x64xf32, #tpu.memory_space<vmem>>, vector<1x48x64xf32>
    %71 = vector.shape_cast %70 : vector<1x48x64xf32> to vector<48x64xf32>
    %72 = vector.broadcast %23 : vector<48x1xf32> to vector<48x64xf32>
    %73 = arith.mulf %72, %71 : vector<48x64xf32>
    %c1_28 = arith.constant 1 : index
    %c0_29 = arith.constant 0 : index
    %c0_30 = arith.constant 0 : index
    %74 = vector.load %arg2[%c1_28, %c0_29, %c0_30] : memref<2x48x64xf32, #tpu.memory_space<vmem>>, vector<1x48x64xf32>
    %75 = vector.shape_cast %74 : vector<1x48x64xf32> to vector<48x64xf32>
    %76 = vector.broadcast %40 : vector<48x1xf32> to vector<48x64xf32>
    %77 = arith.mulf %76, %75 : vector<48x64xf32>
    %78 = tpu.concatenate %73, %77 in 1 : vector<48x64xf32>, vector<48x64xf32> -> vector<48x128xf32>
    %c0_31 = arith.constant 0 : index
    %c0_32 = arith.constant 0 : index
    %c0_33 = arith.constant 0 : index
    %79 = vector.load %arg3[%c0_31, %c0_32, %c0_33] : memref<2x48x64xf32, #tpu.memory_space<vmem>>, vector<1x48x64xf32>
    %80 = vector.shape_cast %79 : vector<1x48x64xf32> to vector<48x64xf32>
    %c1_34 = arith.constant 1 : index
    %c0_35 = arith.constant 0 : index
    %c0_36 = arith.constant 0 : index
    %81 = vector.load %arg3[%c1_34, %c0_35, %c0_36] : memref<2x48x64xf32, #tpu.memory_space<vmem>>, vector<1x48x64xf32>
    %82 = vector.shape_cast %81 : vector<1x48x64xf32> to vector<48x64xf32>
    %83 = tpu.concatenate %80, %82 in 1 : vector<48x64xf32>, vector<48x64xf32> -> vector<48x128xf32>
    %cst_37 = arith.constant dense<0.000000e+00> : vector<48x128xf32>
    %84 = tpu.matmul %69, %78, %cst_37 {dimension_numbers = #tpu.dot_dimension_numbers<[1], [0], [0], [1], [0, 0, 1, 1], [], []>} : vector<48x48xf32>, vector<48x128xf32>, vector<48x128xf32> -> vector<48x128xf32>
    %85 = arith.addf %83, %84 : vector<48x128xf32>
    %86 = vector.broadcast %67 : vector<48x1xf32> to vector<48x128xf32>
    %87 = arith.addf %85, %86 : vector<48x128xf32>
    %cst_38 = arith.constant 0.000000e+00 : f32
    %88 = vector.broadcast %cst_38 : f32 to vector<48x128xf32>
    %89 = arith.maximumf %87, %88 : vector<48x128xf32>
    %cst_39 = arith.constant 1.000000e+00 : f32
    %90 = vector.broadcast %cst_39 : f32 to vector<1x128xf32>
    %91 = tpu.concatenate %89, %90 in 0 : vector<48x128xf32>, vector<1x128xf32> -> vector<49x128xf32>
    %cst_40 = arith.constant dense<0.000000e+00> : vector<49x49xf32>
    %92 = tpu.matmul %91, %91, %cst_40 {dimension_numbers = #tpu.dot_dimension_numbers<[1], [1], [0], [0], [0, 0, 1, 0], [], []>} : vector<49x128xf32>, vector<49x128xf32>, vector<49x49xf32> -> vector<49x49xf32>
    %93 = vector.extract_strided_slice %92 {offsets = [0, 0], sizes = [48, 48], strides = [1, 1]} : vector<49x49xf32> to vector<48x48xf32>
    %94 = vector.extract_strided_slice %92 {offsets = [0, 48], sizes = [48, 1], strides = [1, 1]} : vector<49x49xf32> to vector<48x1xf32>
    %cst_41 = arith.constant dense<0.000000e+00> : vector<104x1xf32>
    %95 = tpu.matmul %7, %94, %cst_41 {dimension_numbers = #tpu.dot_dimension_numbers<[1], [0], [0], [1], [0, 0, 1, 1], [], []>} : vector<104x48xf32>, vector<48x1xf32>, vector<104x1xf32> -> vector<104x1xf32>
    %cst_42 = arith.constant 7.812500e-03 : f32
    %96 = vector.broadcast %cst_42 : f32 to vector<104x1xf32>
    %97 = arith.mulf %95, %96 : vector<104x1xf32>
    %cst_43 = arith.constant dense<0.000000e+00> : vector<104x48xf32>
    %98 = tpu.matmul %7, %93, %cst_43 {dimension_numbers = #tpu.dot_dimension_numbers<[1], [0], [0], [1], [0, 0, 1, 1], [], []>} : vector<104x48xf32>, vector<48x48xf32>, vector<104x48xf32> -> vector<104x48xf32>
    %99 = arith.mulf %98, %7 : vector<104x48xf32>
    %cst_44 = arith.constant dense<0.000000e+00> : vector<104xf32>
    %100 = vector.multi_reduction <add>, %99, %cst_44 [1] : vector<104x48xf32> to vector<104xf32>
    %101 = vector.shape_cast %100 : vector<104xf32> to vector<104x1xf32>
    %cst_45 = arith.constant 7.812500e-03 : f32
    %102 = vector.broadcast %cst_45 : f32 to vector<104x1xf32>
    %103 = arith.mulf %101, %102 : vector<104x1xf32>
    %104 = arith.mulf %97, %97 : vector<104x1xf32>
    %105 = arith.subf %103, %104 : vector<104x1xf32>
    %cst_46 = arith.constant 9.99999974E-6 : f32
    %106 = vector.broadcast %cst_46 : f32 to vector<104x1xf32>
    %107 = arith.addf %105, %106 : vector<104x1xf32>
    %108 = math.rsqrt %107 : vector<104x1xf32>
    %109 = arith.mulf %8, %108 : vector<104x1xf32>
    %110 = arith.mulf %97, %109 : vector<104x1xf32>
    %111 = arith.subf %9, %110 : vector<104x1xf32>
    %112 = vector.broadcast %109 : vector<104x1xf32> to vector<104x48xf32>
    %113 = arith.mulf %112, %7 : vector<104x48xf32>
    %cst_47 = arith.constant dense<0.000000e+00> : vector<104x128xf32>
    %114 = tpu.matmul %113, %89, %cst_47 {dimension_numbers = #tpu.dot_dimension_numbers<[1], [0], [0], [1], [0, 0, 1, 1], [], []>} : vector<104x48xf32>, vector<48x128xf32>, vector<104x128xf32> -> vector<104x128xf32>
    %115 = vector.broadcast %111 : vector<104x1xf32> to vector<104x128xf32>
    %116 = arith.addf %114, %115 : vector<104x128xf32>
    %117 = vector.extract_strided_slice %116 {offsets = [0, 0], sizes = [104, 64], strides = [1, 1]} : vector<104x128xf32> to vector<104x64xf32>
    %c0_48 = arith.constant 0 : index
    %c0_49 = arith.constant 0 : index
    %c0_50 = arith.constant 0 : index
    %118 = vector.load %arg6[%c0_48, %c0_49, %c0_50] : memref<2x104x64xf32, #tpu.memory_space<vmem>>, vector<1x104x64xf32>
    %119 = vector.shape_cast %118 : vector<1x104x64xf32> to vector<104x64xf32>
    %120 = vector.shape_cast %117 : vector<104x64xf32> to vector<1x104x64xf32>
    tpu.vector_store %arg6[%c0_48, %c0_49, %c0_50], %120 {strides = array<i32>} : memref<2x104x64xf32, #tpu.memory_space<vmem>>, vector<1x104x64xf32>,
    %121 = vector.extract_strided_slice %116 {offsets = [0, 64], sizes = [104, 64], strides = [1, 1]} : vector<104x128xf32> to vector<104x64xf32>
    %c1_51 = arith.constant 1 : index
    %c0_52 = arith.constant 0 : index
    %c0_53 = arith.constant 0 : index
    %122 = vector.load %arg6[%c1_51, %c0_52, %c0_53] : memref<2x104x64xf32, #tpu.memory_space<vmem>>, vector<1x104x64xf32>
    %123 = vector.shape_cast %122 : vector<1x104x64xf32> to vector<104x64xf32>
    %124 = vector.shape_cast %121 : vector<104x64xf32> to vector<1x104x64xf32>
    tpu.vector_store %arg6[%c1_51, %c0_52, %c0_53], %124 {strides = array<i32>} : memref<2x104x64xf32, #tpu.memory_space<vmem>>, vector<1x104x64xf32>,
    return
  }
}

</mosaic_0001>

<bundles_post_ra>
// kernel: _lambda_.1
= control target key start
LH: loop header
LB: loop body
LE: loop exit
PB: predicated region body
PF: predicated region fallthrough
CT: control target
= control target key end

     0   :  { %s2428_s23 = smov 48   ;;  %vm78_vm0 = vcmask 64512   ;;  %v2430_v49 = vmov 56   ;;  %s2433_s10 = smov 64   ;;  %s3534_s0 = inlined_call_operand.vmem [shape: f32[2,8], index: 0, kind: input, shape index: {}]   ;;  %s3535_s4 = inlined_call_operand.vmem [shape: f32[48,59], index: 4, kind: input, shape index: {}]   ;;  %s3536_s1 = inlined_call_operand.vmem [shape: f32[2,48,256], index: 1, kind: input, shape index: {}]   ;;  %s3537_s2 = inlined_call_operand.vmem [shape: f32[2,48,64], index: 2, kind: input, shape index: {}]   ;;  %s3538_s3 = inlined_call_operand.vmem [shape: f32[2,48,64], index: 3, kind: input, shape index: {}]   ;;  %s3539_s5 = inlined_call_operand.vmem [shape: f32[104,50], index: 5, kind: input, shape index: {}]   ;;  %s3540_s6 = inlined_call_operand.vmem [shape: f32[2,104,64], index: 6, kind: output, shape index: {}]  }
   0x1   :  { %v42_v0 = vld [vmem:[%s3534_s0] sm:$0x3]  ;;  %v2484_v3 = vld [vmem:[%s3535_s4 + $0x28] sm:$0xff]  ;;  %v2489_v4 = vld [vmem:[%s3535_s4 + $0x18] sm:$0xff]  ;;  %s2429_s0 = smov 80   ;;  %2278 = vset.pattern.permute.xlu0 %v2430_v49  ;;  %2276 = vset.pattern.permute.xlu1 %v2430_v49  ;;  %s2436_s26 = smov 58  }
   0x2   :  { %v43_v1 = vperm.slane %v42_v0, 0  ;;  %v271_v2 = vperm.slane %v42_v0, 1  ;;  %v2494_v5 = vld [vmem:[%s3535_s4 + $0x8] sm:$0xff]  ;;  %v2505_v10 = vld [vmem:[%s3535_s4 + $0x20] sm:$0xff]  ;;  %v2510_v11 = vld [vmem:[%s3535_s4 + $0x10] sm:$0xff]  ;;  %2277 = vset.pattern.permute.xlu2 %v2430_v49 }
   0x3   :  { %v2521_v16 = vld [vmem:[%s3535_s4] sm:$0xff] }
   0x4   :  { %45 = vrot.lane.b32.xlu0 %v43_v1, %s2428_s23 }
   0xc   :  { %273 = vrot.lane.b32.xlu0 %v271_v2, %s2428_s23 }
  0x76   :  { %v46_v6 = vpop.permute.xlu0 %45 }
  0x77   :  { %v53_v7 = vmul.f32 %v46_v6, %v2484_v3  ;;  %v51_v8 = vmul.f32 %v46_v6, %v2489_v4  ;;  %v49_v9 = vmul.f32 %v46_v6, %v2494_v5  ;;  %v52_v13 = vmul.f32 %v46_v6, %v2505_v10 }
  0x78   :  { %v50_v14 = vmul.f32 %v46_v6, %v2510_v11  ;;  %v48_v19 = vmul.f32 %v46_v6, %v2521_v16 }
  0x79   :  { %70 = vrot.lane.b32.xlu1 %v53_v7, %s2429_s0  ;;  %66 = vrot.lane.b32.xlu2 %v51_v8, %s2429_s0 }
  0x7a   :  { %62 = vrot.lane.b32.xlu0 %v49_v9, %s2429_s0 }
  0x7e   :  { %v274_v12 = vpop.permute.xlu0 %273 }
  0x7f   :  { %v280_v15 = vmul.f32 %v274_v12, %v2505_v10  ;;  %v281_v17 = vmul.f32 %v274_v12, %v2484_v3  ;;  %v277_v18 = vmul.f32 %v274_v12, %v2494_v5  ;;  %v279_v20 = vmul.f32 %v274_v12, %v2489_v4 }
  0x80   :  { %v278_v21 = vmul.f32 %v274_v12, %v2510_v11  ;;  %v276_v22 = vmul.f32 %v274_v12, %v2521_v16 }
  0x81   :  { %68 = vrot.lane.b32.xlu1 %v52_v13, %s2429_s0  ;;  %64 = vrot.lane.b32.xlu2 %v50_v14, %s2429_s0 }
  0x82   :  { %296 = vrot.lane.b32.xlu0 %v280_v15, %s2429_s0 }
  0x89   :  { %60 = vrot.lane.b32.xlu1 %v48_v19, %s2429_s0  ;;  %298 = vrot.lane.b32.xlu2 %v281_v17, %s2429_s0 }
  0x8a   :  { %290 = vrot.lane.b32.xlu0 %v277_v18, %s2429_s0 }
  0x91   :  { %294 = vrot.lane.b32.xlu1 %v279_v20, %s2429_s0  ;;  %292 = vrot.lane.b32.xlu2 %v278_v21, %s2429_s0 }
  0x99   :  { %288 = vrot.lane.b32.xlu2 %v276_v22, %s2429_s0 }
  0xd3   :  { %v67_v23 = vpop.permute.xlu2 %66 }
  0xd4   :  { %v88_v24 = vsel %vm78_vm0, %v67_v23, 0.0 }
  0xd5   :  { %89 = vadd.xlane.f32.xlu2 %v88_v24 }
  0xdb   :  { %v65_v25 = vpop.permute.xlu2 %64 }
  0xdc   :  { %v85_v32 = vsel %vm78_vm0, %v65_v25, 0.0 }
  0xe3   :  { %v299_v34 = vpop.permute.xlu2 %298 }
  0xe4   :  { %v321_v38 = vsel %vm78_vm0, %v299_v34, 0.0 }
  0xeb   :  { %v71_v26 = vpop.permute.xlu1 %70  ;;  %v293_v41 = vpop.permute.xlu2 %292 }
  0xec   :  { %v63_v27 = vpop.permute.xlu0 %62  ;;  %v94_v28 = vsel %vm78_vm0, %v71_v26, 0.0  ;;  %v312_v43 = vsel %vm78_vm0, %v293_v41, 0.0 }
  0xed   :  { %95 = vadd.xlane.f32.xlu1 %v94_v28  ;;  %v82_v29 = vsel %vm78_vm0, %v63_v27, 0.0 }
  0xee   :  { %83 = vadd.xlane.f32.xlu2 %v82_v29 }
  0xf3   :  { %v69_v30 = vpop.permute.xlu1 %68  ;;  %v289_v45 = vpop.permute.xlu2 %288 }
  0xf4   :  { %v297_v31 = vpop.permute.xlu0 %296  ;;  %v91_v33 = vsel %vm78_vm0, %v69_v30, 0.0  ;;  %v306_v46 = vsel %vm78_vm0, %v289_v45, 0.0 }
  0xf5   :  { %86 = vadd.xlane.f32.xlu1 %v85_v32  ;;  %92 = vadd.xlane.f32.xlu0 %v91_v33  ;;  %v318_v35 = vsel %vm78_vm0, %v297_v31, 0.0 }
  0xf6   :  { %319 = vadd.xlane.f32.xlu2 %v318_v35 }
  0xfb   :  { %v61_v36 = vpop.permute.xlu1 %60 }
  0xfc   :  { %v291_v37 = vpop.permute.xlu0 %290  ;;  %v79_v39 = vsel %vm78_vm0, %v61_v36, 0.0 }
  0xfd   :  { %322 = vadd.xlane.f32.xlu1 %v321_v38  ;;  %80 = vadd.xlane.f32.xlu0 %v79_v39  ;;  %v309_v40 = vsel %vm78_vm0, %v291_v37, 0.0 }
  0xfe   :  { %310 = vadd.xlane.f32.xlu2 %v309_v40 }
 0x103   :  { %v295_v42 = vpop.permute.xlu1 %294 }
 0x104   :  { %v315_v44 = vsel %vm78_vm0, %v295_v42, 0.0 }
 0x105   :  { %313 = vadd.xlane.f32.xlu1 %v312_v43  ;;  %316 = vadd.xlane.f32.xlu0 %v315_v44 }
 0x10d   :  { %307 = vadd.xlane.f32.xlu0 %v306_v46 }
 0x148   :  { %v90_v47 = vpop.xlane.xlu2 %89 }
 0x149   :  { %v100_v48 = vadd.f32 %v90_v47, %v2489_v4 }
 0x14b   :  { %v106_v50 = vsub.f32 0.0, %v100_v48 }
 0x14d   :  { %v115_v51 = vmul.f32 1.442695, %v106_v50 }
 0x14f   :  { %2336 = vpow2.f32 %v115_v51 }
 0x155   :  { %v2337_v52 = vpop.eup %2336 }
 0x156   :  { %v124_v53 = vadd.f32 1.0, %v2337_v52 }
 0x158   :  { %2338 = vrcp.f32 %v124_v53  ;;  %v183_v61 = vand.u32 2147483648, %v124_v53  ;;  %v181_v0 = vand.u32 2147483647, %v124_v53  ;;  %vm177_vm2 = vweird.f32 %v124_v53 }
 0x15a   :  { %v184_v8 = vor.u32 1.1754944e-38, %v183_v61  ;;  %vm182_vm4 = vcmp.eq.f32.partialorder %v181_v0, 8.507059e+37 }
 0x15e   :  { %v2339_v54 = vpop.eup %2338 }
 0x15f   :  { %v173_v55 = vmul.f32 %v2339_v54, %v124_v53  ;;  %vm178_vm1 = vweird.f32 %v2339_v54 }
 0x160   :  { %v96_v56 = vpop.xlane.xlu1 %95  ;;  %vm179_vm3 = vmor %vm177_vm2, %vm178_vm1 }
 0x161   :  { %v102_v57 = vadd.f32 %v96_v56, %v2484_v3  ;;  %v84_v58 = vpop.xlane.xlu2 %83  ;;  %v174_v59 = vsub.f32 1.0, %v173_v55 }
 0x162   :  { %v98_v60 = vadd.f32 %v84_v58, %v2494_v5 }
 0x163   :  { %v108_v62 = vsub.f32 0.0, %v102_v57  ;;  %v175_v63 = vmul.f32 %v2339_v54, %v174_v59 }
 0x164   :  { %v104_v1 = vsub.f32 0.0, %v98_v60 }
 0x165   :  { %v119_v2 = vmul.f32 1.442695, %v108_v62  ;;  %v176_v6 = vadd.f32 %v2339_v54, %v175_v63 }
 0x166   :  { %v111_v7 = vmul.f32 1.442695, %v104_v1 }
 0x167   :  { %2340 = vpow2.f32 %v119_v2  ;;  %v180_v9 = vsel %vm179_vm3, %v2339_v54, %v176_v6 }
 0x168   :  { %2342 = vpow2.f32 %v111_v7  ;;  %v87_v12 = vpop.xlane.xlu1 %86  ;;  %v93_v13 = vpop.xlane.xlu0 %92  ;;  %v185_v14 = vsel %vm182_vm4, %v184_v8, %v180_v9 }
 0x169   :  { %v99_v15 = vadd.f32 %v87_v12, %v2510_v11  ;;  %v320_v17 = vpop.xlane.xlu2 %319  ;;  %v101_v18 = vadd.f32 %v93_v13, %v2505_v10  ;;  %246 = vperm.xlu0 %2278, %v185_v14  }
 0x16a   :  { %v328_v19 = vadd.f32 %v320_v17, %v2505_v10 }
 0x16b   :  { %v105_v20 = vsub.f32 0.0, %v99_v15  ;;  %v107_v21 = vsub.f32 0.0, %v101_v18 }
 0x16c   :  { %v334_v26 = vsub.f32 0.0, %v328_v19 }
 0x16d   :  { %v2341_v22 = vpop.eup %2340  ;;  %v113_v23 = vmul.f32 1.442695, %v105_v20  ;;  %v117_v27 = vmul.f32 1.442695, %v107_v21 }
 0x16e   :  { %v2343_v24 = vpop.eup %2342  ;;  %v126_v25 = vadd.f32 1.0, %v2341_v22  ;;  %v344_v10 = vmul.f32 1.442695, %v334_v26 }
 0x16f   :  { %2344 = vpow2.f32 %v113_v23  ;;  %v2553_v28 = vadd.f32 1.0, %v2343_v24 }
 0x170   :  { %2346 = vrcp.f32 %v126_v25  ;;  %v323_v29 = vpop.xlane.xlu1 %322  ;;  %v81_v30 = vpop.xlane.xlu0 %80  ;;  %v211_v48 = vand.u32 2147483647, %v126_v25  ;;  %v213_v52 = vand.u32 2147483648, %v126_v25  ;;  %vm207_vm6 = vweird.f32 %v126_v25 }
 0x171   :  { %v329_v31 = vadd.f32 %v323_v29, %v2484_v3  ;;  %v311_v32 = vpop.xlane.xlu2 %310  ;;  %v97_v33 = vadd.f32 %v81_v30, %v2521_v16  ;;  %2348 = vpow2.f32 %v117_v27  ;;  %v151_v21 = vand.u32 2147483647, %v2553_v28 }
 0x172   :  { %v325_v34 = vadd.f32 %v311_v32, %v2494_v5  ;;  %2350 = vrcp.f32 %v2553_v28  ;;  %vm2573_vm7 = vcmp.eq.f32.partialorder %v211_v48, 8.507059e+37  ;;  %v214_v63 = vor.u32 1.1754944e-38, %v213_v52 }
 0x173   :  { %v335_v35 = vsub.f32 0.0, %v329_v31  ;;  %v103_v36 = vsub.f32 0.0, %v97_v33  ;;  %2352 = vpow2.f32 %v344_v10  ;;  %vm147_vm1 = vweird.f32 %v2553_v28 }
 0x174   :  { %v331_v37 = vsub.f32 0.0, %v325_v34  ;;  %vm152_vm4 = vcmp.eq.f32.partialorder %v151_v21, 8.507059e+37 }
 0x175   :  { %v2345_v38 = vpop.eup %2344  ;;  %v346_v39 = vmul.f32 1.442695, %v335_v35  ;;  %v109_v3 = vmul.f32 1.442695, %v103_v36 }
 0x176   :  { %v2347_v40 = vpop.eup %2346  ;;  %v2559_v41 = vadd.f32 1.0, %v2345_v38  ;;  %v338_v42 = vmul.f32 1.442695, %v331_v37 }
 0x177   :  { %2354 = vpow2.f32 %v346_v39  ;;  %v203_v43 = vmul.f32 %v2347_v40, %v126_v25  ;;  %v2349_v45 = vpop.eup %2348  ;;  %vm208_vm5 = vweird.f32 %v2347_v40 }
 0x178   :  { %2356 = vrcp.f32 %v2559_v41  ;;  %v314_v44 = vpop.xlane.xlu1 %313  ;;  %v317_v5 = vpop.xlane.xlu0 %316  ;;  %v2566_v50 = vadd.f32 1.0, %v2349_v45  ;;  %vm209_vm8 = vmor %vm207_vm6, %vm208_vm5  ;;  %v166_v2 = vand.u32 2147483647, %v2559_v41  ;;  %v168_v6 = vand.u32 2147483648, %v2559_v41 }
 0x179   :  { %2358 = vpow2.f32 %v338_v42  ;;  %v326_v46 = vadd.f32 %v314_v44, %v2510_v11  ;;  %v327_v47 = vadd.f32 %v317_v5, %v2489_v4  ;;  %v2564_v49 = vpop.eup %2350  ;;  %v204_v51 = vsub.f32 1.0, %v203_v43 }
 0x17a   :  { %2360 = vpow2.f32 %v109_v3  ;;  %v2353_v55 = vpop.eup %2352  ;;  %v143_v4 = vmul.f32 %v2564_v49, %v2553_v28  ;;  %vm162_vm9 = vweird.f32 %v2559_v41  ;;  %vm2593_vm10 = vcmp.eq.f32.partialorder %v166_v2, 8.507059e+37 }
 0x17b   :  { %v332_v53 = vsub.f32 0.0, %v326_v46  ;;  %v333_v54 = vsub.f32 0.0, %v327_v47  ;;  %2362 = vrcp.f32 %v2566_v50  ;;  %v205_v56 = vmul.f32 %v2347_v40, %v204_v51 }
 0x17c   :  { %v2580_v8 = vadd.f32 1.0, %v2353_v55  ;;  %v144_v13 = vsub.f32 1.0, %v143_v4  ;;  %v169_v29 = vor.u32 1.1754944e-38, %v168_v6  ;;  %v196_v31 = vand.u32 2147483647, %v2566_v50 }
 0x17d   :  { %v2355_v57 = vpop.eup %2354  ;;  %v340_v58 = vmul.f32 1.442695, %v332_v53  ;;  %v342_v11 = vmul.f32 1.442695, %v333_v54  ;;  %v206_v61 = vadd.f32 %v2347_v40, %v205_v56  ;;  %v198_v34 = vand.u32 2147483648, %v2566_v50 }
 0x17e   :  { %v2357_v59 = vpop.eup %2356  ;;  %v2571_v60 = vadd.f32 1.0, %v2355_v57  ;;  %v145_v25 = vmul.f32 %v2564_v49, %v144_v13  ;;  %vm148_vm14 = vweird.f32 %v2564_v49  ;;  %vm192_vm15 = vweird.f32 %v2566_v50 }
 0x17f   :  { %v2359_v0 = vpop.eup %2358  ;;  %2364 = vpow2.f32 %v340_v58  ;;  %v158_v1 = vmul.f32 %v2357_v59, %v2559_v41  ;;  %v210_v12 = vsel %vm209_vm8, %v2347_v40, %v206_v61  ;;  %vm163_vm11 = vweird.f32 %v2357_v59  ;;  %vm2626_vm3 = vmor %vm147_vm1, %vm148_vm14 }
 0x180   :  { %v2361_v7 = vpop.eup %2360  ;;  %2366 = vrcp.f32 %v2571_v60  ;;  %v308_v9 = vpop.xlane.xlu0 %307  ;;  %v215_v17 = vsel %vm2573_vm7, %v214_v63, %v210_v12  ;;  %v2588_v19 = vadd.f32 1.0, %v2359_v0  ;;  %vm164_vm12 = vmor %vm162_vm9, %vm163_vm11  ;;  %v146_v39 = vadd.f32 %v2564_v49, %v145_v25 }
 0x181   :  { %v2583_v14 = vadd.f32 1.0, %v2361_v7  ;;  %2368 = vpow2.f32 %v342_v11  ;;  %v324_v15 = vadd.f32 %v308_v9, %v2521_v16  ;;  %v2363_v18 = vpop.eup %2362  ;;  %256 = vperm.xlu1 %2276, %v215_v17   ;;  %v159_v20 = vsub.f32 1.0, %v158_v1 }
 0x182   :  { %v188_v16 = vmul.f32 %v2363_v18, %v2566_v50  ;;  %vm193_vm13 = vweird.f32 %v2363_v18  ;;  %v153_v41 = vand.u32 2147483648, %v2553_v28  ;;  %v199_v44 = vor.u32 1.1754944e-38, %v198_v34 }
 0x183   :  { %2370 = vrcp.f32 %v2583_v14  ;;  %v330_v22 = vsub.f32 0.0, %v324_v15  ;;  %v160_v24 = vmul.f32 %v2357_v59, %v159_v20  ;;  %vm194_vm0 = vmor %vm192_vm15, %vm193_vm13  ;;  %vm197_vm2 = vcmp.eq.f32.partialorder %v196_v31, 8.507059e+37 }
 0x184   :  { %2372 = vrcp.f32 %v2580_v8  ;;  %v189_v30 = vsub.f32 1.0, %v188_v16  ;;  %v136_v48 = vand.u32 2147483647, %v2583_v14  ;;  %v138_v50 = vand.u32 2147483648, %v2583_v14 }
 0x185   :  { %v2365_v26 = vpop.eup %2364  ;;  %v336_v27 = vmul.f32 1.442695, %v330_v22  ;;  %2374 = vrcp.f32 %v2588_v19  ;;  %v161_v10 = vadd.f32 %v2357_v59, %v160_v24  ;;  %v150_v52 = vsel %vm2626_vm3, %v2564_v49, %v146_v39 }
 0x186   :  { %v2601_v32 = vpop.eup %2366  ;;  %v2604_v33 = vadd.f32 1.0, %v2365_v26  ;;  %v190_v36 = vmul.f32 %v2363_v18, %v189_v30  ;;  %v154_v55 = vor.u32 1.1754944e-38, %v153_v41  ;;  %vm132_vm5 = vweird.f32 %v2583_v14 }
 0x187   :  { %v2369_v35 = vpop.eup %2368  ;;  %2376 = vpow2.f32 %v336_v27  ;;  %v165_v38 = vsel %vm164_vm12, %v2357_v59, %v161_v10  ;;  %v430_v45 = vmul.f32 %v2601_v32, %v2571_v60  ;;  %vm2643_vm7 = vcmp.eq.f32.partialorder %v136_v48, 8.507059e+37 }
 0x188   :  { %2378 = vrcp.f32 %v2604_v33  ;;  %v2611_v37 = vadd.f32 1.0, %v2369_v35  ;;  %v170_v42 = vsel %vm2593_vm10, %v169_v29, %v165_v38  ;;  %v191_v3 = vadd.f32 %v2363_v18, %v190_v36 }
 0x189   :  { %v2371_v40 = vpop.eup %2370  ;;  %241 = vperm.xlu1 %2276, %v170_v42   ;;  %v431_v56 = vsub.f32 1.0, %v430_v45  ;;  %v155_v59 = vsel %vm152_vm4, %v154_v55, %v150_v52  ;;  %v139_v0 = vor.u32 1.1754944e-38, %v138_v50  ;;  %v393_v1 = vand.u32 2147483647, %v2604_v33 }
 0x18a   :  { %v2618_v43 = vpop.eup %2372  ;;  %v128_v5 = vmul.f32 %v2371_v40, %v2583_v14  ;;  %v195_v46 = vsel %vm194_vm0, %v2363_v18, %v191_v3  ;;  %2380 = vrcp.f32 %v2611_v37  ;;  %vm133_vm6 = vweird.f32 %v2371_v40 }
 0x18b   :  { %v2632_v51 = vpop.eup %2374  ;;  %v200_v28 = vsel %vm197_vm2, %v199_v44, %v195_v46  ;;  %v415_v57 = vmul.f32 %v2618_v43, %v2580_v8  ;;  %vm134_vm8 = vmor %vm132_vm5, %vm133_vm6  ;;  %v432_v6 = vmul.f32 %v2601_v32, %v431_v56  ;;  %v395_v14 = vand.u32 2147483648, %v2604_v33 }
 0x18c   :  { %v129_v53 = vsub.f32 1.0, %v128_v5  ;;  %251 = vperm.xlu2 %2277, %v200_v28   ;;  %v370_v9 = vmul.f32 %v2632_v51, %v2588_v19  ;;  %vm419_vm9 = vweird.f32 %v2580_v8  ;;  %vm420_vm10 = vweird.f32 %v2618_v43 }
 0x18d   :  { %v2377_v54 = vpop.eup %2376  ;;  %v416_v62 = vsub.f32 1.0, %v415_v57  ;;  %v425_v18 = vand.u32 2147483648, %v2580_v8  ;;  %vm389_vm12 = vweird.f32 %v2604_v33  ;;  %v423_v21 = vand.u32 2147483647, %v2580_v8  ;;  %vm2669_vm14 = vmor %vm419_vm9, %vm420_vm10 }
 0x18e   :  { %v2379_v58 = vpop.eup %2378  ;;  %v2640_v11 = vadd.f32 1.0, %v2377_v54  ;;  %v130_v4 = vmul.f32 %v2371_v40, %v129_v53  ;;  %v371_v22 = vsub.f32 1.0, %v370_v9  ;;  %v433_v16 = vadd.f32 %v2601_v32, %v432_v6 }
 0x18f   :  { %v385_v49 = vmul.f32 %v2379_v58, %v2604_v33  ;;  %v417_v7 = vmul.f32 %v2618_v43, %v416_v62  ;;  %vm390_vm11 = vweird.f32 %v2379_v58  ;;  %vm435_vm13 = vweird.f32 %v2601_v32 }
 0x190   :  { %2382 = vrcp.f32 %v2640_v11  ;;  %v131_v63 = vadd.f32 %v2371_v40, %v130_v4  ;;  %v2654_v12 = vpop.eup %2380  ;;  %vm391_vm15 = vmor %vm389_vm12, %vm390_vm11  ;;  %v396_v27 = vor.u32 1.1754944e-38, %v395_v14  ;;  %vm434_vm0 = vweird.f32 %v2571_v60  ;;  %v224_v14 = vld [vmem:[%s3536_s1 + $0x38] sm:$0xff] }
 0x191   :  { %v386_v2 = vsub.f32 1.0, %v385_v49  ;;  %v418_v20 = vadd.f32 %v2618_v43, %v417_v7  ;;  %v400_v25 = vmul.f32 %v2654_v12, %v2611_v37  ;;  %v438_v29 = vand.u32 2147483647, %v2571_v60  ;;  %vm436_vm2 = vmor %vm434_vm0, %vm435_vm13 }
 0x192   :  { %v135_v13 = vsel %vm134_vm8, %v2371_v40, %v131_v63  ;;  %v440_v30 = vand.u32 2147483648, %v2571_v60  ;;  %vm394_vm1 = vcmp.eq.f32.partialorder %v393_v1, 8.507059e+37  ;;  %v426_v33 = vor.u32 1.1754944e-38, %v425_v18  ;;  %v2166_v63 = vld [vmem:[%s3536_s1 + $0xb0] sm:$0xff]  ;;  %v225_v1 = vld [vmem:[%s3536_s1 + $0x40] sm:$0xff] }
 0x193   :  { %v140_v15 = vsel %vm2643_vm7, %v139_v0, %v135_v13  ;;  %v387_v17 = vmul.f32 %v2379_v58, %v386_v2  ;;  %v401_v8 = vsub.f32 1.0, %v400_v25  ;;  %v422_v34 = vsel %vm2669_vm14, %v2618_v43, %v418_v20  ;;  %v2167_v0 = vld [vmem:[%s3536_s1 + $0xb8] sm:$0xff]  ;;  %v226_v2 = vld [vmem:[%s3536_s1 + $0x48] sm:$0xff]  ;;  %v219_v25 = vld [vmem:[%s3536_s1 + $0x10] sm:$0xff] }
 0x194   :  { %231 = vperm.xlu1 %2276, %v140_v15   ;;  %236 = vperm.xlu2 %2277, %v155_v59   ;;  %vm424_vm3 = vcmp.eq.f32.partialorder %v423_v21, 8.507059e+37  ;;  %v372_v35 = vmul.f32 %v2632_v51, %v371_v22  ;;  %v437_v36 = vsel %vm436_vm2, %v2601_v32, %v433_v16  ;;  %v441_v39 = vor.u32 1.1754944e-38, %v440_v30  ;;  %v228_v59 = vld [vmem:[%s3536_s1 + $0x58] sm:$0xff]  ;;  %v221_v22 = vld [vmem:[%s3536_s1 + $0x20] sm:$0xff] }
 0x195   :  { %v388_v23 = vadd.f32 %v2379_v58, %v387_v17  ;;  %v402_v38 = vmul.f32 %v2654_v12, %v401_v8  ;;  %vm374_vm4 = vweird.f32 %v2588_v19  ;;  %vm375_vm5 = vweird.f32 %v2632_v51  ;;  %v223_v17 = vld [vmem:[%s3536_s1 + $0x30] sm:$0xff] }
 0x196   :  { %v2383_v26 = vpop.eup %2382  ;;  %vm439_vm6 = vcmp.eq.f32.partialorder %v438_v29, 8.507059e+37  ;;  %v427_v40 = vsel %vm424_vm3, %v426_v33, %v422_v34  ;;  %v380_v42 = vand.u32 2147483648, %v2588_v19  ;;  %v373_v41 = vadd.f32 %v2632_v51, %v372_v35  ;;  %vm376_vm7 = vmor %vm374_vm4, %vm375_vm5  ;;  %v218_v33 = vld [vmem:[%s3536_s1 + $0x8] sm:$0xff]  ;;  %v2164_v34 = vld [vmem:[%s3536_s1 + $0xa0] sm:$0xff] }
 0x197   :  { %v392_v31 = vsel %vm391_vm15, %v2379_v58, %v388_v23  ;;  %v355_v60 = vmul.f32 %v2383_v26, %v2640_v11  ;;  %v442_v3 = vsel %vm439_vm6, %v441_v39, %v437_v36  ;;  %v378_v43 = vand.u32 2147483647, %v2588_v19  ;;  %v222_v23 = vld [vmem:[%s3536_s1 + $0x28] sm:$0xff] }
 0x198   :  { %v397_v10 = vsel %vm394_vm1, %v396_v27, %v392_v31  ;;  %v403_v32 = vadd.f32 %v2654_v12, %v402_v38  ;;  %vm405_vm8 = vweird.f32 %v2654_v12  ;;  %v410_v5 = vand.u32 2147483648, %v2611_v37  ;;  %v217_v31 = vld [vmem:[%s3536_s1] sm:$0xff]  ;;  %v2165_v35 = vld [vmem:[%s3536_s1 + $0xa8] sm:$0xff] }
 0x199   :  { %469 = vperm.xlu0 %2278, %v397_v10   ;;  %v356_v44 = vsub.f32 1.0, %v355_v60  ;;  %v381_v45 = vor.u32 1.1754944e-38, %v380_v42  ;;  %vm404_vm9 = vweird.f32 %v2611_v37  ;;  %v408_v46 = vand.u32 2147483647, %v2611_v37  ;;  %v2163_v42 = vld [vmem:[%s3536_s1 + $0x98] sm:$0xff] }
 0x19a   :  { %v377_v47 = vsel %vm376_vm7, %v2632_v51, %v373_v41  ;;  %vm379_vm10 = vcmp.eq.f32.partialorder %v378_v43, 8.507059e+37  ;;  %vm406_vm11 = vmor %vm404_vm9, %vm405_vm8  ;;  %v411_v50 = vor.u32 1.1754944e-38, %v410_v5  ;;  %vm360_vm13 = vweird.f32 %v2383_v26 }
 0x19b   :  { %v407_v19 = vsel %vm406_vm11, %v2654_v12, %v403_v32  ;;  %v357_v48 = vmul.f32 %v2383_v26, %v356_v44  ;;  %v382_v28 = vsel %vm379_vm10, %v381_v45, %v377_v47  ;;  %vm409_vm12 = vcmp.eq.f32.partialorder %v408_v46, 8.507059e+37  ;;  %v2160_v32 = vld [vmem:[%s3536_s1 + $0x80] sm:$0xff]  ;;  %v2161_v44 = vld [vmem:[%s3536_s1 + $0x88] sm:$0xff]  ;;  %v2158_v47 = vld [vmem:[%s3536_s1 + $0x70] sm:$0xff] }
 0x19c   :  { %479 = vperm.xlu1 %2276, %v427_v40   ;;  %484 = vperm.xlu2 %2277, %v442_v3   ;;  %v412_v52 = vsel %vm409_vm12, %v411_v50, %v407_v19  ;;  %v365_v54 = vand.u32 2147483648, %v2640_v11  ;;  %vm359_vm14 = vweird.f32 %v2640_v11  ;;  %v363_v37 = vand.u32 2147483647, %v2640_v11  ;;  %v227_v11 = vld [vmem:[%s3536_s1 + $0x50] sm:$0xff]  ;;  %v2159_v19 = vld [vmem:[%s3536_s1 + $0x78] sm:$0xff] }
 0x19d   :  { %v358_v53 = vadd.f32 %v2383_v26, %v357_v48  ;;  %vm361_vm15 = vmor %vm359_vm14, %vm360_vm13  ;;  %v2431_v57 = vmov 1.0   ;;  %v2162_v40 = vld [vmem:[%s3536_s1 + $0x90] sm:$0xff]  ;;  %vm671_vm1 = vcmask 392192  }
 0x19e   :  { %v366_v55 = vor.u32 1.1754944e-38, %v365_v54  ;;  %vm364_vm0 = vcmp.eq.f32.partialorder %v363_v37, 8.507059e+37  ;;  %508 = vmatpush.xpose.msra.mxu0 %v2431_v57  ;;  %2250 = vmatpush.xpose.msra.mxu1 %v2431_v57 }
 0x19f   :  { %v362_v51 = vsel %vm361_vm15, %v2383_v26, %v358_v53  ;;  %582 = vmatpush.xpose.msra.mxu2 %v2431_v57  ;;  %619 = vmatpush.xpose.msra.mxu3 %v2431_v57  ;;  %v220_v26 = vld [vmem:[%s3536_s1 + $0x18] sm:$0xff]  ;;  %v2157_v53 = vld [vmem:[%s3536_s1 + $0x68] sm:$0xff] }
 0x1a0   :  { %v367_v56 = vsel %vm364_vm0, %v366_v55, %v362_v51 }
 0x1a4   :  { %464 = vperm.xlu1 %2276, %v382_v28   ;;  %474 = vperm.xlu2 %2277, %v412_v52   ;;  %v2156_v52 = vld [vmem:[%s3536_s1 + $0x60] sm:$0xff] }
 0x1ac   :  { %459 = vperm.xlu2 %2277, %v367_v56  }
 0x1db   :  { %v2751_v15 = vpop.permute.xlu0 %246 }
 0x1dc   :  { %v266_v20 = vmul.f32 %v2751_v15, %v224_v14  ;;  %v2763_v21 = vmul.f32 %v2751_v15, %v223_v17 }
 0x1e6   :  { %v2704_v58 = vpop.permute.xlu2 %251 }
 0x1e7   :  { %v2745_v12 = vmul.f32 %v2704_v58, %v225_v1  ;;  %v268_v13 = vmul.f32 %v2704_v58, %v226_v2 }
 0x1ee   :  { %v2706_v4 = vpop.permute.xlu2 %236 }
 0x1ef   :  { %v261_v27 = vmul.f32 %v2706_v4, %v219_v25  ;;  %v2785_v29 = vmul.f32 %v2706_v4, %v220_v26 }
 0x1f3   :  { %v2714_v61 = vpop.permute.xlu1 %256 }
 0x1f4   :  { %v2717_v49 = vmul.f32 %v2714_v61, %v227_v11  ;;  %v2720_v62 = vmul.f32 %v2714_v61, %v228_v59 }
 0x1f6   :  { %v2734_v6 = vpop.permute.xlu2 %484  ;;  %509 = vmatpush.xpose.msra.mxu0 %v2717_v49  ;;  %2251 = vmatpush.xpose.msra.mxu1 %v2720_v62 }
 0x1f7   :  { %v2739_v7 = vmul.f32 %v2166_v63, %v2734_v6  ;;  %v2742_v9 = vmul.f32 %v2167_v0, %v2734_v6 }
 0x1f9   :  { %583 = vmatpush.xpose.msra.mxu2 %v2739_v7  ;;  %620 = vmatpush.xpose.msra.mxu3 %v2742_v9 }
 0x1fa   :  { %510 = vmatpush.xpose.msra.mxu0 %v2745_v12  ;;  %2252 = vmatpush.xpose.msra.mxu1 %v268_v13 }
 0x1fb   :  { %v2759_v18 = vpop.permute.xlu1 %241 }
 0x1fc   :  { %v263_v16 = vmul.f32 %v2759_v18, %v221_v22  ;;  %v2774_v24 = vmul.f32 %v2759_v18, %v222_v23 }
 0x1fe   :  { %511 = vmatpush.xpose.msra.mxu0 %v2763_v21  ;;  %2253 = vmatpush.xpose.msra.mxu1 %v266_v20  ;;  %v2812_v39 = vpop.permute.xlu2 %474 }
 0x1ff   :  { %v493_v3 = vmul.f32 %v2162_v40, %v2812_v39  ;;  %v494_v41 = vmul.f32 %v2163_v42, %v2812_v39 }
 0x202   :  { %512 = vmatpush.xpose.msra.mxu0 %v263_v16  ;;  %2254 = vmatpush.xpose.msra.mxu1 %v2774_v24 }
 0x206   :  { %v2787_v30 = vpop.permute.xlu1 %231  ;;  %513 = vmatpush.xpose.msra.mxu0 %v261_v27  ;;  %2255 = vmatpush.xpose.msra.mxu1 %v2785_v29  ;;  %v2843_v28 = vpop.permute.xlu2 %459 }
 0x207   :  { %v259_v8 = vmul.f32 %v2787_v30, %v217_v31  ;;  %v2798_v10 = vmul.f32 %v2787_v30, %v218_v33  ;;  %v487_v54 = vmul.f32 %v2156_v52, %v2843_v28  ;;  %v488_v37 = vmul.f32 %v2157_v53, %v2843_v28 }
 0x20a   :  { %514 = vmatpush.xpose.msra.mxu0 %v259_v8  ;;  %2256 = vmatpush.xpose.msra.mxu1 %v2798_v10 }
 0x20b   :  { %v2823_v43 = vpop.permute.xlu0 %469 }
 0x20c   :  { %v491_v5 = vmul.f32 %v2160_v32, %v2823_v43  ;;  %v492_v45 = vmul.f32 %v2161_v44, %v2823_v43 }
 0x20d   :  { %515 = vmatmul.f32.vlgmr.msra.gmra.mxu0 %v259_v8  ;;  %561 = vmatmul.f32.vlgmr.msra.gmra.mxu1 %v266_v20 }
 0x20e   :  { %545 = vmatpush.xpose.msrb.mxu0 %v2431_v57  ;;  %v2808_v36 = vpop.permute.xlu1 %479 }
 0x20f   :  { %v495_v38 = vmul.f32 %v2164_v34, %v2808_v36  ;;  %v496_v60 = vmul.f32 %v2165_v35, %v2808_v36 }
 0x211   :  { %584 = vmatpush.xpose.msra.mxu2 %v495_v38  ;;  %621 = vmatpush.xpose.msra.mxu3 %v496_v60 }
 0x212   :  { %546 = vmatpush.xpose.msrb.mxu0 %v2720_v62 }
 0x215   :  { %585 = vmatpush.xpose.msra.mxu2 %v493_v3  ;;  %622 = vmatpush.xpose.msra.mxu3 %v494_v41 }
 0x216   :  { %547 = vmatpush.xpose.msrb.mxu0 %v268_v13  ;;  %564 = vmatmul.f32.gmra.mxu1 %v268_v13  ;;  %v2833_v46 = vpop.permute.xlu1 %464 }
 0x217   :  { %518 = vmatmul.f32.gmra.mxu0 %v261_v27  ;;  %v489_v48 = vmul.f32 %v2158_v47, %v2833_v46  ;;  %v490_v50 = vmul.f32 %v2159_v19, %v2833_v46 }
 0x219   :  { %586 = vmatpush.xpose.msra.mxu2 %v491_v5  ;;  %623 = vmatpush.xpose.msra.mxu3 %v492_v45 }
 0x21a   :  { %548 = vmatpush.xpose.msrb.mxu0 %v266_v20 }
 0x21d   :  { %587 = vmatpush.xpose.msra.mxu2 %v489_v48  ;;  %624 = vmatpush.xpose.msra.mxu3 %v490_v50 }
 0x21e   :  { %549 = vmatpush.xpose.msrb.mxu0 %v2774_v24  ;;  %567 = vmatmul.f32.gmra.mxu1 %v2720_v62 }
 0x21f   :  { %521 = vmatmul.f32.gmra.mxu0 %v263_v16 }
 0x221   :  { %588 = vmatpush.xpose.msra.mxu2 %v487_v54  ;;  %625 = vmatpush.xpose.msra.mxu3 %v488_v37 }
 0x222   :  { %550 = vmatpush.xpose.msrb.mxu0 %v2785_v29 }
 0x224   :  { %589 = vmatmul.f32.vlgmr.msra.gmra.mxu2 %v487_v54  ;;  %626 = vmatmul.f32.vlgmr.msra.gmra.mxu3 %v488_v37  ;;  %v2875_v54 = vld [vmem:[%s3535_s4] sm:$0xff]  ;;  %v2882_v37 = vld [vmem:[%s3535_s4 + $0x8] sm:$0xff] }
 0x226   :  { %551 = vmatpush.xpose.msrb.mxu0 %v2798_v10  ;;  %570 = vmatmul.f32.gmra.mxu1 %v2431_v57 }
 0x227   :  { %524 = vmatmul.f32.gmra.mxu0 %v2763_v21 }
 0x22c   :  { %592 = vmatmul.f32.gmra.mxu2 %v489_v48  ;;  %629 = vmatmul.f32.gmra.mxu3 %v490_v50 }
 0x22f   :  { %527 = vmatmul.f32.gmra.mxu0 %v2745_v12 }
 0x234   :  { %595 = vmatmul.f32.gmra.mxu2 %v491_v5  ;;  %632 = vmatmul.f32.gmra.mxu3 %v492_v45 }
 0x237   :  { %530 = vmatmul.f32.gmra.mxu0 %v2717_v49 }
 0x23c   :  { %598 = vmatmul.f32.gmra.mxu2 %v493_v3  ;;  %635 = vmatmul.f32.gmra.mxu3 %v494_v41 }
 0x23f   :  { %533 = vmatmul.f32.gmra.mxu0 %v2431_v57 }
 0x244   :  { %601 = vmatmul.f32.gmra.mxu2 %v495_v38  ;;  %638 = vmatmul.f32.gmra.mxu3 %v496_v60 }
 0x247   :  { %552 = vmatmul.f32.vlgmr.msrb.gmra.mxu0 %v2798_v10 }
 0x24c   :  { %604 = vmatmul.f32.gmra.mxu2 %v2739_v7  ;;  %641 = vmatmul.f32.gmra.mxu3 %v2742_v9 }
 0x24f   :  { %555 = vmatmul.f32.gmra.mxu0 %v2785_v29 }
 0x254   :  { %644 = vmatmul.f32.gmra.mxu3 %v2431_v57  ;;  %607 = vmatmul.f32.gmra.mxu2 %v2431_v57 }
 0x257   :  { %558 = vmatmul.f32.gmra.mxu0 %v2774_v24 }
 0x28a   :  { %v516_v51 = vpop.f32.mrf.mxu0  ;;  %v562_v55 = vpop.f32.mrf.mxu1 }
 0x293   :  { %v565_v11 = vpop.f32.mrf.mxu1 }
 0x294   :  { %v519_v56 = vpop.f32.mrf.mxu0 }
 0x29b   :  { %v568_v49 = vpop.f32.mrf.mxu1 }
 0x29c   :  { %v522_v59 = vpop.f32.mrf.mxu0 }
 0x2a3   :  { %v571_v63 = vpop.f32.mrf.mxu1 }
 0x2a4   :  { %v525_v62 = vpop.f32.mrf.mxu0 }
 0x2a5   :  { %v563_v35 = vadd.f32 %v562_v55, %v525_v62  ;;  %v2896_v55 = vld [vmem:[%s3535_s4 + $0x18] sm:$0xff] }
 0x2a7   :  { %v590_v0 = vpop.f32.mrf.mxu2  ;;  %v627_v1 = vpop.f32.mrf.mxu3 }
 0x2ac   :  { %v528_v2 = vpop.f32.mrf.mxu0 }
 0x2ad   :  { %v566_v26 = vadd.f32 %v565_v11, %v528_v2  ;;  %v2910_v11 = vld [vmem:[%s3535_s4 + $0x28] sm:$0xff] }
 0x2af   :  { %v593_v7 = vpop.f32.mrf.mxu2  ;;  %v630_v9 = vpop.f32.mrf.mxu3 }
 0x2b4   :  { %v531_v12 = vpop.f32.mrf.mxu0 }
 0x2b5   :  { %v569_v31 = vadd.f32 %v568_v49, %v531_v12 }
 0x2b7   :  { %v596_v13 = vpop.f32.mrf.mxu2  ;;  %v633_v14 = vpop.f32.mrf.mxu3 }
 0x2bc   :  { %v534_v17 = vpop.f32.mrf.mxu0 }
 0x2bf   :  { %v599_v20 = vpop.f32.mrf.mxu2  ;;  %v636_v21 = vpop.f32.mrf.mxu3 }
 0x2c0   :  { %v600_v42 = vadd.f32 %v599_v20, %v563_v35 }
 0x2c2   :  { %v637_v47 = vadd.f32 %v636_v21, %v600_v42 }
 0x2c4   :  { %v553_v22 = vpop.f32.mrf.mxu0 }
 0x2c5   :  { %v554_v24 = vadd.f32 %v553_v22, %v516_v51  ;;  %v2889_v51 = vld [vmem:[%s3535_s4 + $0x10] sm:$0xff] }
 0x2c7   :  { %v602_v23 = vpop.f32.mrf.mxu2  ;;  %v639_v16 = vpop.f32.mrf.mxu3  ;;  %v591_v27 = vadd.f32 %v590_v0, %v554_v24 }
 0x2c8   :  { %v603_v33 = vadd.f32 %v602_v23, %v566_v26 }
 0x2c9   :  { %v628_v38 = vadd.f32 %v627_v1, %v591_v27 }
 0x2ca   :  { %v640_v3 = vadd.f32 %v639_v16, %v603_v33 }
 0x2cc   :  { %v556_v25 = vpop.f32.mrf.mxu0 }
 0x2cd   :  { %v557_v29 = vadd.f32 %v556_v25, %v519_v56  ;;  %v2903_v56 = vld [vmem:[%s3535_s4 + $0x20] sm:$0xff]  ;;  %s2432_s4 = smov 57  }
 0x2cf   :  { %v594_v8 = vadd.f32 %v593_v7, %v557_v29  ;;  %v605_v10 = vpop.f32.mrf.mxu2  ;;  %v642_v34 = vpop.f32.mrf.mxu3 }
 0x2d0   :  { %v606_v40 = vadd.f32 %v605_v10, %v569_v31 }
 0x2d1   :  { %v631_v60 = vadd.f32 %v630_v9, %v594_v8 }
 0x2d2   :  { %v643_v41 = vadd.f32 %v642_v34, %v606_v40 }
 0x2d3   :  { %v2289_v32 = vpack.i.bf16 %v628_v38, %v631_v60 }
 0x2d4   :  { %v559_v44 = vpop.f32.mrf.mxu0  ;;  %v2279_v5 = vpack.i.bf16 %v640_v3, %v643_v41  ;;  %741 = vmatpush.msrb.mxu1 %v643_v41 }
 0x2d5   :  { %v560_v45 = vadd.f32 %v559_v44, %v522_v59  ;;  %2290 = vrot.lane.b32.xlu2 %v2289_v32, %s2429_s0 }
 0x2d6   :  { %2280 = vrot.lane.b32.xlu0 %v2279_v5, %s2429_s0  ;;  %742 = vmatpush.msrb.mxu1 %v640_v3 }
 0x2d7   :  { %v597_v19 = vadd.f32 %v596_v13, %v560_v45  ;;  %v645_v48 = vpop.f32.mrf.mxu3  ;;  %v608_v50 = vpop.f32.mrf.mxu2 }
 0x2d8   :  { %743 = vmatpush.msrb.mxu1 %v637_v47 }
 0x2d9   :  { %v634_v52 = vadd.f32 %v633_v14, %v597_v19 }
 0x2db   :  { %v2284_v53 = vpack.i.bf16 %v634_v52, %v637_v47  ;;  %744 = vmatpush.msrb.mxu1 %v634_v52 }
 0x2dd   :  { %2285 = vrot.lane.b32.xlu1 %v2284_v53, %s2429_s0  ;;  %745 = vmatpush.msrb.mxu1 %v631_v60 }
 0x2df   :  { %746 = vmatpush.msrb.mxu1 %v628_v38 }
 0x2e0   :  { %2174 = vmatmul.msk.f32.vlgmr.msrb.gmra.mxu1 %vm671_vm1, %v2875_v54 }
 0x2e8   :  { %2175 = vmatmul.msk.f32.gmra.mxu1 %vm671_vm1, %v2882_v37 }
 0x2f0   :  { %2176 = vmatmul.msk.f32.gmra.mxu1 %vm671_vm1, %v2889_v51 }
 0x2f8   :  { %2177 = vmatmul.msk.f32.gmra.mxu1 %vm671_vm1, %v2896_v55 }
 0x300   :  { %2178 = vmatmul.msk.f32.gmra.mxu1 %vm671_vm1, %v2903_v56 }
 0x308   :  { %2179 = vmatmul.msk.f32.gmra.mxu1 %vm671_vm1, %v2910_v11 }
 0x32f   :  { %v2291_v1 = vpop.permute.xlu2 %2290 }
 0x330   :  { %v2292_v7 = vunpack.i.l.bf16 %v2291_v1  ;;  %v2293_v9 = vunpack.i.h.bf16 %v2291_v1 }
 0x348   :  { %v2281_v59 = vpop.permute.xlu0 %2280 }
 0x349   :  { %v2282_v49 = vunpack.i.l.bf16 %v2281_v59  ;;  %v2283_v62 = vunpack.i.h.bf16 %v2281_v59 }
 0x34b   :  { %700 = vmatpush.msrb.mxu3 %v2282_v49 }
 0x34d   :  { %701 = vmatpush.msrb.mxu3 %v2283_v62 }
 0x34f   :  { %v2286_v63 = vpop.permute.xlu1 %2285 }
 0x350   :  { %v2287_v0 = vunpack.i.l.bf16 %v2286_v63  ;;  %v2288_v2 = vunpack.i.h.bf16 %v2286_v63 }
 0x352   :  { %702 = vmatpush.msrb.mxu3 %v2287_v0 }
 0x354   :  { %703 = vmatpush.msrb.mxu3 %v2288_v2 }
 0x356   :  { %704 = vmatpush.msrb.mxu3 %v2292_v7 }
 0x358   :  { %705 = vmatpush.msrb.mxu3 %v2293_v9 }
 0x359   :  { %2168 = vmatmul.msk.f32.vlgmr.msrb.gmra.mxu3 %vm671_vm1, %v2875_v54 }
 0x35a   :  { %1203 = vmatpush.xpose.msra.mxu3 %v2431_v57 }
 0x35d   :  { %v748_v12 = vpop.f32.mrf.mxu1 }
 0x35e   :  { %v766_v13 = vmul.f32 %v2875_v54, %v748_v12 }
 0x360   :  { %v772_v14 = vsel %vm671_vm1, %v766_v13, 0.0 }
 0x361   :  { %2169 = vmatmul.msk.f32.gmra.mxu3 %vm671_vm1, %v2882_v37  ;;  %773 = vadd.xlane.f32.xlu0 %v772_v14 }
 0x365   :  { %v751_v17 = vpop.f32.mrf.mxu1 }
 0x366   :  { %v767_v20 = vmul.f32 %v2882_v37, %v751_v17 }
 0x368   :  { %v775_v21 = vsel %vm671_vm1, %v767_v20, 0.0 }
 0x369   :  { %2170 = vmatmul.msk.f32.gmra.mxu3 %vm671_vm1, %v2889_v51  ;;  %776 = vadd.xlane.f32.xlu1 %v775_v21 }
 0x36d   :  { %v754_v22 = vpop.f32.mrf.mxu1 }
 0x36e   :  { %v768_v23 = vmul.f32 %v2889_v51, %v754_v22 }
 0x370   :  { %v778_v16 = vsel %vm671_vm1, %v768_v23, 0.0 }
 0x371   :  { %2171 = vmatmul.msk.f32.gmra.mxu3 %vm671_vm1, %v2896_v55  ;;  %779 = vadd.xlane.f32.xlu2 %v778_v16 }
 0x375   :  { %v757_v24 = vpop.f32.mrf.mxu1 }
 0x376   :  { %v769_v25 = vmul.f32 %v2896_v55, %v757_v24 }
 0x378   :  { %v781_v26 = vsel %vm671_vm1, %v769_v25, 0.0 }
 0x379   :  { %2172 = vmatmul.msk.f32.gmra.mxu3 %vm671_vm1, %v2903_v56  ;;  %782 = vadd.xlane.f32.xlu0 %v781_v26 }
 0x37d   :  { %v760_v27 = vpop.f32.mrf.mxu1 }
 0x37e   :  { %v770_v29 = vmul.f32 %v2903_v56, %v760_v27 }
 0x380   :  { %v784_v31 = vsel %vm671_vm1, %v770_v29, 0.0 }
 0x381   :  { %2173 = vmatmul.msk.f32.gmra.mxu3 %vm671_vm1, %v2910_v11  ;;  %785 = vadd.xlane.f32.xlu1 %v784_v31 }
 0x385   :  { %v763_v33 = vpop.f32.mrf.mxu1 }
 0x386   :  { %v771_v8 = vmul.f32 %v2910_v11, %v763_v33 }
 0x388   :  { %v787_v10 = vsel %vm671_vm1, %v771_v8, 0.0 }
 0x389   :  { %788 = vadd.xlane.f32.xlu2 %v787_v10 }
 0x3d4   :  { %v774_v34 = vpop.xlane.xlu0 %773 }
 0x3d5   :  { %v790_v60 = vmul.f32 0.001953125, %v774_v34 }
 0x3dc   :  { %v707_v35 = vpop.f32.mrf.mxu3  ;;  %v777_v3 = vpop.xlane.xlu1 %776 }
 0x3dd   :  { %v2939_v38 = vmul.f32 0.001953125, %v707_v35  ;;  %v791_v5 = vmul.f32 0.001953125, %v777_v3 }
 0x3df   :  { %v796_v40 = vmul.f32 %v2939_v38, %v2939_v38 }
 0x3e1   :  { %v802_v42 = vsub.f32 %v790_v60, %v796_v40  ;;  %v2184_v60 = vld [vmem:[%s3537_s2 + $0x50] sm:$0xff] }
 0x3e3   :  { %v808_v41 = vadd.f32 1e-05, %v802_v42 }
 0x3e4   :  { %v710_v32 = vpop.f32.mrf.mxu3  ;;  %v780_v19 = vpop.xlane.xlu2 %779 }
 0x3e5   :  { %2384 = vrsqrt.f32 %v808_v41  ;;  %v2943_v44 = vmul.f32 0.001953125, %v710_v32  ;;  %v792_v49 = vmul.f32 0.001953125, %v780_v19  ;;  %vm820_vm3 = vweird.f32 %v808_v41 }
 0x3e7   :  { %v797_v45 = vmul.f32 %v2943_v44, %v2943_v44 }
 0x3e9   :  { %v803_v47 = vsub.f32 %v791_v5, %v797_v45  ;;  %v1017_v5 = vmul.f32 %v2184_v60, %v2808_v36  ;;  %v2181_v36 = vld [vmem:[%s3537_s2 + $0x38] sm:$0xff] }
 0x3eb   :  { %v2385_v48 = vpop.eup %2384  ;;  %v809_v50 = vadd.f32 1e-05, %v803_v47 }
 0x3ec   :  { %v815_v52 = vmul.f32 %v2385_v48, %v808_v41  ;;  %v713_v53 = vpop.f32.mrf.mxu3  ;;  %v783_v2 = vpop.xlane.xlu0 %782  ;;  %vm821_vm2 = vweird.f32 %v2385_v48  ;;  %v2185_v41 = vld [vmem:[%s3537_s2 + $0x58] sm:$0xff] }
 0x3ed   :  { %2386 = vrsqrt.f32 %v809_v50  ;;  %v2947_v59 = vmul.f32 0.001953125, %v713_v53  ;;  %v793_v21 = vmul.f32 0.001953125, %v783_v2  ;;  %vm822_vm4 = vmor %vm820_vm3, %vm821_vm2  ;;  %vm830_vm6 = vweird.f32 %v809_v50 }
 0x3ee   :  { %v816_v62 = vmul.f32 %v2385_v48, %v815_v52 }
 0x3ef   :  { %v798_v63 = vmul.f32 %v2947_v59, %v2947_v59 }
 0x3f0   :  { %v817_v0 = vmul.f32 0.5, %v816_v62 }
 0x3f1   :  { %v804_v1 = vsub.f32 %v792_v49, %v798_v63 }
 0x3f2   :  { %v818_v7 = vsub.f32 1.5, %v817_v0 }
 0x3f3   :  { %v2387_v9 = vpop.eup %2386  ;;  %v810_v12 = vadd.f32 1e-05, %v804_v1 }
 0x3f4   :  { %v825_v13 = vmul.f32 %v2387_v9, %v809_v50  ;;  %v716_v14 = vpop.f32.mrf.mxu3  ;;  %v819_v17 = vmul.f32 %v2385_v48, %v818_v7  ;;  %v786_v26 = vpop.xlane.xlu1 %785  ;;  %vm831_vm5 = vweird.f32 %v2387_v9  ;;  %v1018_v50 = vmul.f32 %v2185_v41, %v2734_v6  ;;  %v2182_v6 = vld [vmem:[%s3537_s2 + $0x40] sm:$0xff] }
 0x3f5   :  { %2388 = vrsqrt.f32 %v810_v12  ;;  %v2951_v20 = vmul.f32 0.001953125, %v716_v14  ;;  %v794_v35 = vmul.f32 0.001953125, %v786_v26  ;;  %vm832_vm7 = vmor %vm830_vm6, %vm831_vm5  ;;  %vm840_vm9 = vweird.f32 %v810_v12  ;;  %v2183_v14 = vld [vmem:[%s3537_s2 + $0x48] sm:$0xff] }
 0x3f6   :  { %v823_v22 = vsel %vm822_vm4, %v2385_v48, %v819_v17  ;;  %v826_v23 = vmul.f32 %v2387_v9, %v825_v13  ;;  %v2294_v1 = vpack.i.bf16 %v1017_v5, %v1018_v50  ;;  %v1014_v17 = vmul.f32 %v2181_v36, %v2833_v46 }
 0x3f7   :  { %v799_v16 = vmul.f32 %v2951_v20, %v2951_v20  ;;  %880 = vrot.lane.b32.xlu0 %v823_v22, %s2432_s4  ;;  %v1015_v22 = vmul.f32 %v2182_v6, %v2823_v43  ;;  %v1016_v26 = vmul.f32 %v2183_v14, %v2812_v39  ;;  %v2434_v5 = vmov 57  }
 0x3f8   :  { %v827_v24 = vmul.f32 0.5, %v826_v23  ;;  %2311 = vset.pattern.permute.xlu0 %v2434_v5  ;;  %2309 = vset.pattern.permute.xlu2 %v2434_v5  ;;  %vm1043_vm5 = vcmask 523264  }
 0x3f9   :  { %v805_v25 = vsub.f32 %v793_v21, %v799_v16  ;;  %2310 = vset.pattern.permute.xlu1 %v2434_v5 }
 0x3fa   :  { %v828_v27 = vsub.f32 1.5, %v827_v24 }
 0x3fb   :  { %v2389_v29 = vpop.eup %2388  ;;  %v811_v31 = vadd.f32 1e-05, %v805_v25 }
 0x3fc   :  { %v835_v33 = vmul.f32 %v2389_v29, %v810_v12  ;;  %v719_v8 = vpop.f32.mrf.mxu3  ;;  %v829_v10 = vmul.f32 %v2387_v9, %v828_v27  ;;  %v789_v47 = vpop.xlane.xlu2 %788  ;;  %vm841_vm8 = vweird.f32 %v2389_v29  ;;  %v2180_v12 = vld [vmem:[%s3537_s2 + $0x30] sm:$0xff] }
 0x3fd   :  { %2390 = vrsqrt.f32 %v811_v31  ;;  %v2956_v34 = vmul.f32 0.001953125, %v719_v8  ;;  %v795_v0 = vmul.f32 0.001953125, %v789_v47  ;;  %vm842_vm10 = vmor %vm840_vm9, %vm841_vm8  ;;  %v1013_v24 = vmul.f32 %v2180_v12, %v2843_v28 }
 0x3fe   :  { %v833_v40 = vsel %vm832_vm7, %v2387_v9, %v829_v10  ;;  %v836_v42 = vmul.f32 %v2389_v29, %v835_v33  ;;  %vm850_vm12 = vweird.f32 %v811_v31  ;;  %v2299_v10 = vpack.i.bf16 %v1015_v22, %v1016_v26 }
 0x3ff   :  { %v800_v3 = vmul.f32 %v2956_v34, %v2956_v34  ;;  %882 = vrot.lane.b32.xlu1 %v833_v40, %s2432_s4  ;;  %v2304_v33 = vpack.i.bf16 %v1013_v24, %v1014_v17 }
 0x400   :  { %v837_v32 = vmul.f32 0.5, %v836_v42 }
 0x401   :  { %v806_v45 = vsub.f32 %v794_v35, %v800_v3 }
 0x402   :  { %v838_v19 = vsub.f32 1.5, %v837_v32 }
 0x403   :  { %v2391_v48 = vpop.eup %2390  ;;  %v812_v52 = vadd.f32 1e-05, %v806_v45 }
 0x404   :  { %v845_v53 = vmul.f32 %v2391_v48, %v811_v31  ;;  %v722_v49 = vpop.f32.mrf.mxu3  ;;  %v839_v62 = vmul.f32 %v2389_v29, %v838_v19  ;;  %vm851_vm11 = vweird.f32 %v2391_v48 }
 0x405   :  { %2392 = vrsqrt.f32 %v812_v52  ;;  %v2969_v63 = vmul.f32 0.001953125, %v722_v49  ;;  %vm852_vm13 = vmor %vm850_vm12, %vm851_vm11  ;;  %vm860_vm15 = vweird.f32 %v812_v52 }
 0x406   :  { %v843_v2 = vsel %vm842_vm10, %v2389_v29, %v839_v62  ;;  %v846_v7 = vmul.f32 %v2391_v48, %v845_v53  ;;  %v999_v53 = vld [vmem:[%s3537_s2 + $0x28] sm:$0xff] }
 0x407   :  { %v801_v9 = vmul.f32 %v2969_v63, %v2969_v63  ;;  %2295 = vrot.lane.b32.xlu1 %v2294_v1, %s2433_s10  ;;  %884 = vrot.lane.b32.xlu2 %v843_v2, %s2432_s4  ;;  %v1005_v2 = vmul.f32 %v999_v53, %v2714_v61 }
 0x408   :  { %v847_v13 = vmul.f32 0.5, %v846_v7  ;;  %v997_v7 = vld [vmem:[%s3537_s2 + $0x18] sm:$0xff] }
 0x409   :  { %v807_v21 = vsub.f32 %v795_v0, %v801_v9  ;;  %v998_v0 = vld [vmem:[%s3537_s2 + $0x20] sm:$0xff]  ;;  %v1003_v14 = vmul.f32 %v997_v7, %v2751_v15 }
 0x40a   :  { %v848_v23 = vsub.f32 1.5, %v847_v13  ;;  %v1004_v12 = vmul.f32 %v998_v0, %v2704_v58  ;;  %v996_v13 = vld [vmem:[%s3537_s2 + $0x10] sm:$0xff]  ;;  %v994_v15 = vld [vmem:[%s3537_s2] sm:$0xff] }
 0x40b   :  { %v2393_v16 = vpop.eup %2392  ;;  %v813_v25 = vadd.f32 1e-05, %v807_v21  ;;  %v995_v21 = vld [vmem:[%s3537_s2 + $0x8] sm:$0xff]  ;;  %s2435_s2 = smov 71  }
 0x40c   :  { %v855_v27 = vmul.f32 %v2393_v16, %v812_v52  ;;  %v849_v29 = vmul.f32 %v2391_v48, %v848_v23  ;;  %vm861_vm14 = vweird.f32 %v2393_v16  ;;  %v1002_v23 = vmul.f32 %v996_v13, %v2759_v18 }
 0x40d   :  { %2394 = vrsqrt.f32 %v813_v25  ;;  %vm862_vm0 = vmor %vm860_vm15, %vm861_vm14  ;;  %vm870_vm3 = vweird.f32 %v813_v25  ;;  %v1001_v24 = vmul.f32 %v995_v21, %v2706_v4  ;;  %v1000_v18 = vmul.f32 %v994_v15, %v2787_v30 }
 0x40e   :  { %v853_v8 = vsel %vm852_vm13, %v2391_v48, %v849_v29  ;;  %v856_v46 = vmul.f32 %v2393_v16, %v855_v27 }
 0x40f   :  { %886 = vrot.lane.b32.xlu0 %v853_v8, %s2432_s4  ;;  %2305 = vrot.lane.b32.xlu1 %v2304_v33, %s2433_s10 }
 0x410   :  { %2300 = vrot.lane.b32.xlu2 %v2299_v10, %s2433_s10  ;;  %v857_v43 = vmul.f32 0.5, %v856_v46 }
 0x412   :  { %v858_v28 = vsub.f32 1.5, %v857_v43 }
 0x413   :  { %v2395_v35 = vpop.eup %2394 }
 0x414   :  { %v865_v39 = vmul.f32 %v2395_v35, %v813_v25  ;;  %v859_v60 = vmul.f32 %v2393_v16, %v858_v28  ;;  %vm871_vm2 = vweird.f32 %v2395_v35 }
 0x415   :  { %vm872_vm4 = vmor %vm870_vm3, %vm871_vm2 }
 0x416   :  { %v863_v31 = vsel %vm862_vm0, %v2393_v16, %v859_v60  ;;  %v866_v40 = vmul.f32 %v2395_v35, %v865_v39 }
 0x417   :  { %888 = vrot.lane.b32.xlu0 %v863_v31, %s2432_s4 }
 0x418   :  { %v867_v42 = vmul.f32 0.5, %v866_v40 }
 0x41a   :  { %v868_v3 = vsub.f32 1.5, %v867_v42 }
 0x41c   :  { %v869_v41 = vmul.f32 %v2395_v35, %v868_v3 }
 0x41e   :  { %v873_v32 = vsel %vm872_vm4, %v2395_v35, %v869_v41 }
 0x41f   :  { %890 = vrot.lane.b32.xlu0 %v873_v32, %s2432_s4 }
 0x461   :  { %v885_v45 = vpop.permute.xlu2 %884 }
 0x462   :  { %v900_v47 = vmul.f32 %v2889_v51, %v885_v45 }
 0x464   :  { %973 = vperm.xlu0 %2311, %v900_v47  }
 0x469   :  { %v881_v19 = vpop.permute.xlu0 %880 }
 0x46a   :  { %v898_v48 = vmul.f32 %v2875_v54, %v881_v19  ;;  %v2301_v49 = vpop.permute.xlu2 %2300 }
 0x46b   :  { %v2302_v6 = vunpack.i.l.bf16 %v2301_v49  ;;  %v2303_v17 = vunpack.i.h.bf16 %v2301_v49 }
 0x46c   :  { %965 = vperm.xlu2 %2309, %v898_v48  }
 0x46d   :  { %v1047_v22 = vsel %vm1043_vm5, %v1003_v14, %v2302_v6  ;;  %v1046_v29 = vsel %vm1043_vm5, %v1002_v23, %v2303_v17 }
 0x471   :  { %v883_v50 = vpop.permute.xlu1 %882 }
 0x472   :  { %v899_v52 = vmul.f32 %v2882_v37, %v883_v50 }
 0x474   :  { %969 = vperm.xlu1 %2310, %v899_v52  }
 0x479   :  { %v2296_v62 = vpop.permute.xlu1 %2295 }
 0x47a   :  { %v2298_v1 = vunpack.i.h.bf16 %v2296_v62  ;;  %v2297_v36 = vunpack.i.l.bf16 %v2296_v62  ;;  %v2190_v62 = vld [vmem:[%s3538_s3 + $0x50] sm:$0xff] }
 0x47c   :  { %v1049_v9 = vsel %vm1043_vm5, %v1005_v2, %v2297_v36  ;;  %v1048_v61 = vsel %vm1043_vm5, %v1004_v12, %v2298_v1  ;;  %v2437_v1 = vmov 58  }
 0x47d   :  { %1121 = vmatpush.msrb.mxu2 %v1049_v9  ;;  %2313 = vset.pattern.permute.xlu0 %v2437_v1  ;;  %v2187_v9 = vld [vmem:[%s3538_s3 + $0x38] sm:$0xff] }
 0x47f   :  { %1122 = vmatpush.msrb.mxu2 %v1048_v61 }
 0x481   :  { %v887_v58 = vpop.permute.xlu0 %886  ;;  %v2306_v16 = vpop.permute.xlu1 %2305  ;;  %1123 = vmatpush.msrb.mxu2 %v1047_v22 }
 0x482   :  { %v901_v25 = vmul.f32 %v2896_v55, %v887_v58  ;;  %v2308_v26 = vunpack.i.h.bf16 %v2306_v16  ;;  %v2307_v27 = vunpack.i.l.bf16 %v2306_v16 }
 0x483   :  { %1124 = vmatpush.msrb.mxu2 %v1046_v29  ;;  %v1053_v29 = vld [vmem:[%s3538_s3 + $0x18] sm:$0xff] }
 0x484   :  { %977 = vperm.xlu2 %2309, %v901_v25   ;;  %v1045_v33 = vsel %vm1043_vm5, %v1001_v24, %v2307_v27  ;;  %v1044_v8 = vsel %vm1043_vm5, %v1000_v18, %v2308_v26  ;;  %v1054_v26 = vld [vmem:[%s3538_s3 + $0x20] sm:$0xff] }
 0x485   :  { %1125 = vmatpush.msrb.mxu2 %v1045_v33 }
 0x487   :  { %1126 = vmatpush.msrb.mxu2 %v1044_v8 }
 0x489   :  { %v889_v4 = vpop.permute.xlu0 %888 }
 0x48a   :  { %v902_v10 = vmul.f32 %v2903_v56, %v889_v4 }
 0x48c   :  { %981 = vperm.xlu1 %2310, %v902_v10   ;;  %918 = vrot.lane.b32.xlu0 %v902_v10, %s2435_s2 }
 0x491   :  { %v891_v46 = vpop.permute.xlu0 %890 }
 0x492   :  { %v903_v43 = vmul.f32 %v2910_v11, %v891_v46 }
 0x494   :  { %920 = vrot.lane.b32.xlu1 %v903_v43, %s2435_s2  ;;  %985 = vperm.xlu2 %2309, %v903_v43  }
 0x495   :  { %912 = vrot.lane.b32.xlu0 %v899_v52, %s2435_s2  ;;  %2312 = vset.pattern.permute.xlu1 %v2437_v1 }
 0x49c   :  { %916 = vrot.lane.b32.xlu2 %v901_v25, %s2435_s2  ;;  %914 = vrot.lane.b32.xlu1 %v900_v47, %s2435_s2 }
 0x49d   :  { %2314 = vset.pattern.permute.xlu2 %v2437_v1 }
 0x4a4   :  { %910 = vrot.lane.b32.xlu2 %v898_v48, %s2435_s2 }
 0x4c6   :  { %v966_v30 = vpop.permute.xlu2 %965 }
 0x4c7   :  { %v988_v28 = vmul.f32 %v2875_v54, %v966_v30 }
 0x4c9   :  { %2192 = vmatmul.msk.f32.vlgmr.msrb.gmra.mxu2 %vm671_vm1, %v988_v28 }
 0x4d6   :  { %v974_v31 = vpop.permute.xlu0 %973 }
 0x4d7   :  { %v990_v42 = vmul.f32 %v2889_v51, %v974_v31 }
 0x4de   :  { %v978_v35 = vpop.permute.xlu2 %977 }
 0x4df   :  { %v991_v41 = vmul.f32 %v2896_v55, %v978_v35 }
 0x4e6   :  { %v970_v39 = vpop.permute.xlu1 %969 }
 0x4e7   :  { %v989_v60 = vmul.f32 %v2882_v37, %v970_v39 }
 0x4e9   :  { %2193 = vmatmul.msk.f32.gmra.mxu2 %vm671_vm1, %v989_v60 }
 0x4ee   :  { %v986_v40 = vpop.permute.xlu2 %985 }
 0x4f1   :  { %2194 = vmatmul.msk.f32.gmra.mxu2 %vm671_vm1, %v990_v42 }
 0x4f6   :  { %v917_v3 = vpop.permute.xlu2 %916 }
 0x4f7   :  { %v931_v32 = vmul.f32 %v917_v3, %v2951_v20  ;;  %v993_v20 = vmul.f32 %v2910_v11, %v986_v40  ;;  %v1052_v3 = vld [vmem:[%s3538_s3 + $0x10] sm:$0xff] }
 0x4f9   :  { %946 = vrot.lane.b32.xlu2 %v931_v32, %s2436_s26  ;;  %2195 = vmatmul.msk.f32.gmra.mxu2 %vm671_vm1, %v991_v41 }
 0x4fe   :  { %v982_v5 = vpop.permute.xlu1 %981  ;;  %v919_v45 = vpop.permute.xlu0 %918 }
 0x4ff   :  { %v992_v47 = vmul.f32 %v2903_v56, %v982_v5  ;;  %v932_v19 = vmul.f32 %v919_v45, %v2956_v34  ;;  %v911_v48 = vpop.permute.xlu2 %910  ;;  %v1050_v5 = vld [vmem:[%s3538_s3] sm:$0xff] }
 0x500   :  { %v928_v50 = vmul.f32 %v911_v48, %v2939_v38 }
 0x501   :  { %948 = vrot.lane.b32.xlu0 %v932_v19, %s2436_s26  ;;  %2196 = vmatmul.msk.f32.gmra.mxu2 %vm671_vm1, %v992_v47  ;;  %v1051_v47 = vld [vmem:[%s3538_s3 + $0x8] sm:$0xff] }
 0x502   :  { %940 = vrot.lane.b32.xlu2 %v928_v50, %s2436_s26 }
 0x506   :  { %v921_v52 = vpop.permute.xlu1 %920 }
 0x507   :  { %v933_v53 = vmul.f32 %v921_v52, %v2969_v63  ;;  %v913_v49 = vpop.permute.xlu0 %912  ;;  %v2189_v63 = vld [vmem:[%s3538_s3 + $0x48] sm:$0xff] }
 0x508   :  { %v929_v0 = vmul.f32 %v913_v49, %v2943_v44  ;;  %v2191_v44 = vld [vmem:[%s3538_s3 + $0x58] sm:$0xff] }
 0x509   :  { %950 = vrot.lane.b32.xlu1 %v933_v53, %s2436_s26  ;;  %2197 = vmatmul.msk.f32.gmra.mxu2 %vm671_vm1, %v993_v20 }
 0x50a   :  { %942 = vrot.lane.b32.xlu0 %v929_v0, %s2436_s26  ;;  %1077 = vrot.lane.b32.xlu2 %v2190_v62, %s2433_s10 }
 0x50e   :  { %v915_v38 = vpop.permute.xlu1 %914 }
 0x50f   :  { %v930_v34 = vmul.f32 %v915_v38, %v2947_v59 }
 0x511   :  { %944 = vrot.lane.b32.xlu1 %v930_v34, %s2436_s26 }
 0x512   :  { %1075 = vrot.lane.b32.xlu2 %v2189_v63, %s2433_s10 }
 0x519   :  { %1079 = vrot.lane.b32.xlu1 %v2191_v44, %s2433_s10 }
 0x54c   :  { %v1128_v22 = vpop.f32.mrf.mxu2 }
 0x553   :  { %v947_v36 = vpop.permute.xlu2 %946 }
 0x554   :  { %v961_v59 = vsub.f32 %v2896_v55, %v947_v36  ;;  %v2188_v55 = vld [vmem:[%s3538_s3 + $0x40] sm:$0xff] }
 0x556   :  { %1169 = vperm.xlu1 %2312, %v961_v59  }
 0x55c   :  { %v941_v13 = vpop.permute.xlu2 %940 }
 0x56c   :  { %v1131_v23 = vpop.f32.mrf.mxu2 }
 0x573   :  { %v949_v2 = vpop.permute.xlu0 %948 }
 0x574   :  { %v962_v7 = vsub.f32 %v2903_v56, %v949_v2  ;;  %v958_v56 = vsub.f32 %v2875_v54, %v941_v13  ;;  %v1134_v58 = vpop.f32.mrf.mxu2  ;;  %v1078_v54 = vpop.permute.xlu2 %1077 }
 0x575   :  { %v1091_v33 = vsel %vm1043_vm5, %v1054_v26, %v1078_v54  ;;  %v3188_v54 = vld [vmem:[%s3539_s5 + $0x58] sm:$0xff] }
 0x576   :  { %1174 = vperm.xlu1 %2312, %v962_v7  }
 0x57b   :  { %v951_v6 = vpop.permute.xlu1 %950 }
 0x57c   :  { %v963_v12 = vsub.f32 %v2910_v11, %v951_v6  ;;  %v943_v61 = vpop.permute.xlu0 %942  ;;  %v2186_v11 = vld [vmem:[%s3538_s3 + $0x30] sm:$0xff]  ;;  %v1076_v25 = vpop.permute.xlu2 %1075 }
 0x57d   :  { %v959_v21 = vsub.f32 %v2882_v37, %v943_v61  ;;  %v1055_v37 = vld [vmem:[%s3538_s3 + $0x28] sm:$0xff]  ;;  %v1090_v4 = vsel %vm1043_vm5, %v1053_v29, %v1076_v25  ;;  %v3132_v61 = vld [vmem:[%s3539_s5 + $0x18] sm:$0xff] }
 0x57e   :  { %1179 = vperm.xlu0 %2313, %v963_v12   ;;  %1071 = vrot.lane.b32.xlu1 %v2187_v9, %s2433_s10 }
 0x583   :  { %v945_v14 = vpop.permute.xlu1 %944 }
 0x584   :  { %v960_v17 = vsub.f32 %v2889_v51, %v945_v14  ;;  %v1137_v51 = vpop.f32.mrf.mxu2 }
 0x585   :  { %v1149_v28 = vadd.f32 %v1137_v51, %v1090_v4  ;;  %v3174_v51 = vld [vmem:[%s3539_s5 + $0x48] sm:$0xff] }
 0x586   :  { %1073 = vrot.lane.b32.xlu0 %v2188_v55, %s2433_s10  ;;  %1164 = vperm.xlu2 %2314, %v960_v17   ;;  %v3111_v55 = vld [vmem:[%s3539_s5] sm:$0xff]  ;;  %v3118_v17 = vld [vmem:[%s3539_s5 + $0x8] sm:$0xff] }
 0x587   :  { %1154 = vperm.xlu1 %2312, %v958_v56   ;;  %v3125_v56 = vld [vmem:[%s3539_s5 + $0x10] sm:$0xff] }
 0x58b   :  { %v1080_v16 = vpop.permute.xlu1 %1079 }
 0x58c   :  { %v1140_v24 = vpop.f32.mrf.mxu2  ;;  %v1092_v18 = vsel %vm1043_vm5, %v1055_v37, %v1080_v16  ;;  %v3181_v16 = vld [vmem:[%s3539_s5 + $0x50] sm:$0xff] }
 0x58d   :  { %v1150_v10 = vadd.f32 %v1140_v24, %v1091_v33  ;;  %v3195_v24 = vld [vmem:[%s3539_s5 + $0x60] sm:$0xff] }
 0x58e   :  { %1159 = vperm.xlu0 %2313, %v959_v21   ;;  %1069 = vrot.lane.b32.xlu2 %v2186_v11, %s2433_s10  ;;  %v3139_v11 = vld [vmem:[%s3539_s5 + $0x20] sm:$0xff]  ;;  %v3146_v21 = vld [vmem:[%s3539_s5 + $0x28] sm:$0xff] }
 0x594   :  { %v1143_v8 = vpop.f32.mrf.mxu2 }
 0x595   :  { %v1151_v46 = vadd.f32 %v1143_v8, %v1092_v18 }
 0x5c8   :  { %v1170_v15 = vpop.permute.xlu1 %1169 }
 0x5c9   :  { %v1185_v60 = vadd.f32 %v1170_v15, %v1149_v28 }
 0x5cb   :  { %v1191_v41 = vmax.f32 %v1185_v60, 0.0 }
 0x5e0   :  { %v1165_v43 = vpop.permute.xlu2 %1164 }
 0x5e8   :  { %v1175_v27 = vpop.permute.xlu1 %1174  ;;  %v1070_v45 = vpop.permute.xlu2 %1069 }
 0x5e9   :  { %v1186_v35 = vadd.f32 %v1175_v27, %v1150_v10  ;;  %v1087_v50 = vsel %vm1043_vm5, %v1050_v5, %v1070_v45 }
 0x5ea   :  { %v1146_v62 = vadd.f32 %v1128_v22, %v1087_v50  ;;  %v3153_v22 = vld [vmem:[%s3539_s5 + $0x30] sm:$0xff] }
 0x5eb   :  { %v1192_v42 = vmax.f32 %v1186_v35, 0.0 }
 0x5f0   :  { %v1180_v30 = vpop.permute.xlu0 %1179  ;;  %v1072_v40 = vpop.permute.xlu1 %1071 }
 0x5f1   :  { %v1187_v39 = vadd.f32 %v1180_v30, %v1151_v46  ;;  %v1088_v52 = vsel %vm1043_vm5, %v1051_v47, %v1072_v40 }
 0x5f2   :  { %v1147_v0 = vadd.f32 %v1131_v23, %v1088_v52  ;;  %v3160_v23 = vld [vmem:[%s3539_s5 + $0x38] sm:$0xff] }
 0x5f3   :  { %v1193_v31 = vmax.f32 %v1187_v39, 0.0 }
 0x5f5   :  { %1204 = vmatpush.xpose.msra.mxu3 %v1193_v31  ;;  %2027 = vmatpush.msra.mxu2 %v1193_v31 }
 0x5f7   :  { %2028 = vmatpush.msra.mxu2 %v1192_v42 }
 0x5f8   :  { %v1074_v32 = vpop.permute.xlu0 %1073 }
 0x5f9   :  { %v1089_v19 = vsel %vm1043_vm5, %v1052_v3, %v1074_v32  ;;  %1205 = vmatpush.xpose.msra.mxu3 %v1192_v42  ;;  %2029 = vmatpush.msra.mxu2 %v1191_v41  ;;  %v1155_v49 = vpop.permute.xlu1 %1154 }
 0x5fa   :  { %v1148_v48 = vadd.f32 %v1134_v58, %v1089_v19  ;;  %v1182_v34 = vadd.f32 %v1155_v49, %v1146_v62  ;;  %v3167_v58 = vld [vmem:[%s3539_s5 + $0x40] sm:$0xff]  ;;  %s2439_s5 = smov 49  }
 0x5fc   :  { %v1184_v20 = vadd.f32 %v1165_v43, %v1148_v48  ;;  %v1188_v1 = vmax.f32 %v1182_v34, 0.0 }
 0x5fd   :  { %1206 = vmatpush.xpose.msra.mxu3 %v1191_v41 }
 0x5fe   :  { %v1190_v53 = vmax.f32 %v1184_v20, 0.0 }
 0x600   :  { %v1160_v38 = vpop.permute.xlu0 %1159  ;;  %2030 = vmatpush.msra.mxu2 %v1190_v53 }
 0x601   :  { %v1183_v63 = vadd.f32 %v1160_v38, %v1147_v0  ;;  %1207 = vmatpush.xpose.msra.mxu3 %v1190_v53 }
 0x603   :  { %v1189_v44 = vmax.f32 %v1183_v63, 0.0 }
 0x605   :  { %1208 = vmatpush.xpose.msra.mxu3 %v1189_v44  ;;  %2031 = vmatpush.msra.mxu2 %v1189_v44 }
 0x607   :  { %2032 = vmatpush.msra.mxu2 %v1188_v1 }
 0x609   :  { %1209 = vmatpush.xpose.msra.mxu3 %v1188_v1 }
 0x60c   :  { %1210 = vmatmul.f32.vlgmr.msra.gmra.mxu3 %v1188_v1 }
 0x60d   :  { %2257 = vmatpush.msrb.mxu3 %v1193_v31 }
 0x60f   :  { %2258 = vmatpush.msrb.mxu3 %v1192_v42 }
 0x611   :  { %2259 = vmatpush.msrb.mxu3 %v1191_v41 }
 0x613   :  { %2260 = vmatpush.msrb.mxu3 %v1190_v53 }
 0x614   :  { %1213 = vmatmul.f32.gmra.mxu3 %v1189_v44 }
 0x615   :  { %2261 = vmatpush.msrb.mxu3 %v1189_v44 }
 0x617   :  { %2262 = vmatpush.msrb.mxu3 %v1188_v1 }
 0x61c   :  { %1216 = vmatmul.f32.gmra.mxu3 %v1190_v53 }
 0x624   :  { %1219 = vmatmul.f32.gmra.mxu3 %v1191_v41 }
 0x62c   :  { %1222 = vmatmul.f32.gmra.mxu3 %v1192_v42 }
 0x634   :  { %1225 = vmatmul.f32.gmra.mxu3 %v1193_v31 }
 0x63c   :  { %1228 = vmatmul.f32.gmra.mxu3 %v2431_v57 }
 0x68f   :  { %v1211_v36 = vpop.f32.mrf.mxu3 }
 0x697   :  { %v1214_v59 = vpop.f32.mrf.mxu3 }
 0x698   :  { %v2325_v2 = vpack.i.bf16 %v1211_v36, %v1214_v59 }
 0x69a   :  { %2326 = vrot.lane.b32.xlu1 %v2325_v2, %s2429_s0 }
 0x69f   :  { %v1217_v7 = vpop.f32.mrf.mxu3 }
 0x6a7   :  { %v1220_v6 = vpop.f32.mrf.mxu3 }
 0x6a8   :  { %v2320_v9 = vpack.i.bf16 %v1217_v7, %v1220_v6 }
 0x6aa   :  { %2321 = vrot.lane.b32.xlu2 %v2320_v9, %s2429_s0 }
 0x6af   :  { %v1223_v12 = vpop.f32.mrf.mxu3 }
 0x6b7   :  { %v1226_v13 = vpop.f32.mrf.mxu3 }
 0x6b8   :  { %v2315_v14 = vpack.i.bf16 %v1223_v12, %v1226_v13  ;;  %1373 = vmatpush.msra.mxu1 %v1226_v13 }
 0x6ba   :  { %2316 = vrot.lane.b32.xlu0 %v2315_v14, %s2429_s0  ;;  %1374 = vmatpush.msra.mxu1 %v1223_v12 }
 0x6bc   :  { %1375 = vmatpush.msra.mxu1 %v1220_v6 }
 0x6be   :  { %1376 = vmatpush.msra.mxu1 %v1217_v7 }
 0x6bf   :  { %v1229_v57 = vpop.f32.mrf.mxu3 }
 0x6c0   :  { %1377 = vmatpush.msra.mxu1 %v1214_v59 }
 0x6c2   :  { %1378 = vmatpush.msra.mxu1 %v1211_v36 }
 0x6c3   :  { %2211 = vmatmul.msk.f32.vlgmr.msra.gmra.mxu1 %vm671_vm1, %v3111_v55 }
 0x6cb   :  { %2212 = vmatmul.msk.f32.gmra.mxu1 %vm671_vm1, %v3118_v17 }
 0x6d3   :  { %2213 = vmatmul.msk.f32.gmra.mxu1 %vm671_vm1, %v3125_v56 }
 0x6db   :  { %2214 = vmatmul.msk.f32.gmra.mxu1 %vm671_vm1, %v3132_v61 }
 0x6e3   :  { %2215 = vmatmul.msk.f32.gmra.mxu1 %vm671_vm1, %v3139_v11 }
 0x6eb   :  { %2216 = vmatmul.msk.f32.gmra.mxu1 %vm671_vm1, %v3146_v21 }
 0x6f3   :  { %2217 = vmatmul.msk.f32.gmra.mxu1 %vm671_vm1, %v3153_v22 }
 0x6fb   :  { %2218 = vmatmul.msk.f32.gmra.mxu1 %vm671_vm1, %v3160_v23 }
 0x703   :  { %2219 = vmatmul.msk.f32.gmra.mxu1 %vm671_vm1, %v3167_v58 }
 0x704   :  { %v2322_v26 = vpop.permute.xlu2 %2321 }
 0x705   :  { %v2323_v27 = vunpack.i.l.bf16 %v2322_v26  ;;  %v2324_v33 = vunpack.i.h.bf16 %v2322_v26 }
 0x70b   :  { %2220 = vmatmul.msk.f32.gmra.mxu1 %vm671_vm1, %v3174_v51 }
 0x70c   :  { %v2327_v29 = vpop.permute.xlu1 %2326 }
 0x70d   :  { %v2328_v18 = vunpack.i.l.bf16 %v2327_v29  ;;  %v2329_v8 = vunpack.i.h.bf16 %v2327_v29 }
 0x713   :  { %2221 = vmatmul.msk.f32.gmra.mxu1 %vm671_vm1, %v3181_v16 }
 0x71b   :  { %2222 = vmatmul.msk.f32.gmra.mxu1 %vm671_vm1, %v3188_v54 }
 0x723   :  { %2223 = vmatmul.msk.f32.gmra.mxu1 %vm671_vm1, %v3195_v24 }
 0x72c   :  { %v2317_v15 = vpop.permute.xlu0 %2316 }
 0x72d   :  { %v2318_v25 = vunpack.i.l.bf16 %v2317_v15  ;;  %v2319_v37 = vunpack.i.h.bf16 %v2317_v15 }
 0x72f   :  { %1304 = vmatpush.msra.mxu0 %v2318_v25 }
 0x731   :  { %1305 = vmatpush.msra.mxu0 %v2319_v37 }
 0x733   :  { %1306 = vmatpush.msra.mxu0 %v2323_v27 }
 0x735   :  { %1307 = vmatpush.msra.mxu0 %v2324_v33 }
 0x737   :  { %1308 = vmatpush.msra.mxu0 %v2328_v18 }
 0x739   :  { %1309 = vmatpush.msra.mxu0 %v2329_v8 }
 0x73a   :  { %2198 = vmatmul.msk.f32.vlgmr.msra.gmra.mxu0 %vm671_vm1, %v3111_v55 }
 0x740   :  { %v1380_v4 = vpop.f32.mrf.mxu1 }
 0x741   :  { %v1419_v10 = vmul.f32 %v1380_v4, %v3111_v55 }
 0x742   :  { %2199 = vmatmul.msk.f32.gmra.mxu0 %vm671_vm1, %v3118_v17 }
 0x743   :  { %v1432_v46 = vsel %vm671_vm1, %v1419_v10, 0.0 }
 0x744   :  { %1433 = vadd.xlane.f32.xlu0 %v1432_v46 }
 0x748   :  { %v1383_v43 = vpop.f32.mrf.mxu1 }
 0x749   :  { %v1420_v30 = vmul.f32 %v1383_v43, %v3118_v17 }
 0x74a   :  { %2200 = vmatmul.msk.f32.gmra.mxu0 %vm671_vm1, %v3125_v56 }
 0x74b   :  { %v1435_v28 = vsel %vm671_vm1, %v1420_v30, 0.0 }
 0x74c   :  { %1436 = vadd.xlane.f32.xlu2 %v1435_v28 }
 0x750   :  { %v1386_v35 = vpop.f32.mrf.mxu1 }
 0x751   :  { %v1421_v39 = vmul.f32 %v1386_v35, %v3125_v56 }
 0x752   :  { %2201 = vmatmul.msk.f32.gmra.mxu0 %vm671_vm1, %v3132_v61 }
 0x753   :  { %v1438_v60 = vsel %vm671_vm1, %v1421_v39, 0.0 }
 0x754   :  { %1439 = vadd.xlane.f32.xlu1 %v1438_v60 }
 0x758   :  { %v1389_v31 = vpop.f32.mrf.mxu1 }
 0x759   :  { %v1422_v40 = vmul.f32 %v1389_v31, %v3132_v61 }
 0x75a   :  { %2202 = vmatmul.msk.f32.gmra.mxu0 %vm671_vm1, %v3139_v11 }
 0x75b   :  { %v1441_v42 = vsel %vm671_vm1, %v1422_v40, 0.0 }
 0x75c   :  { %1442 = vadd.xlane.f32.xlu0 %v1441_v42 }
 0x760   :  { %v1392_v3 = vpop.f32.mrf.mxu1 }
 0x761   :  { %v1423_v41 = vmul.f32 %v1392_v3, %v3139_v11 }
 0x762   :  { %2203 = vmatmul.msk.f32.gmra.mxu0 %vm671_vm1, %v3146_v21 }
 0x763   :  { %v1444_v32 = vsel %vm671_vm1, %v1423_v41, 0.0 }
 0x764   :  { %1445 = vadd.xlane.f32.xlu2 %v1444_v32 }
 0x768   :  { %v1395_v5 = vpop.f32.mrf.mxu1 }
 0x769   :  { %v1424_v45 = vmul.f32 %v1395_v5, %v3146_v21 }
 0x76a   :  { %2204 = vmatmul.msk.f32.gmra.mxu0 %vm671_vm1, %v3153_v22 }
 0x76b   :  { %v1447_v47 = vsel %vm671_vm1, %v1424_v45, 0.0 }
 0x76c   :  { %1448 = vadd.xlane.f32.xlu1 %v1447_v47 }
 0x770   :  { %v1398_v19 = vpop.f32.mrf.mxu1 }
 0x771   :  { %v1425_v48 = vmul.f32 %v1398_v19, %v3153_v22 }
 0x772   :  { %2205 = vmatmul.msk.f32.gmra.mxu0 %vm671_vm1, %v3160_v23 }
 0x773   :  { %v1450_v50 = vsel %vm671_vm1, %v1425_v48, 0.0 }
 0x774   :  { %1451 = vadd.xlane.f32.xlu0 %v1450_v50 }
 0x778   :  { %v1401_v52 = vpop.f32.mrf.mxu1 }
 0x779   :  { %v1426_v20 = vmul.f32 %v1401_v52, %v3160_v23 }
 0x77a   :  { %2206 = vmatmul.msk.f32.gmra.mxu0 %vm671_vm1, %v3167_v58 }
 0x77b   :  { %v1453_v53 = vsel %vm671_vm1, %v1426_v20, 0.0 }
 0x77c   :  { %1454 = vadd.xlane.f32.xlu2 %v1453_v53 }
 0x780   :  { %v1404_v49 = vpop.f32.mrf.mxu1 }
 0x781   :  { %v1427_v38 = vmul.f32 %v1404_v49, %v3167_v58 }
 0x782   :  { %2207 = vmatmul.msk.f32.gmra.mxu0 %vm671_vm1, %v3174_v51 }
 0x783   :  { %v1456_v63 = vsel %vm671_vm1, %v1427_v38, 0.0 }
 0x784   :  { %1457 = vadd.xlane.f32.xlu0 %v1456_v63 }
 0x788   :  { %v1407_v62 = vpop.f32.mrf.mxu1 }
 0x789   :  { %v1428_v0 = vmul.f32 %v1407_v62, %v3174_v51 }
 0x78a   :  { %2208 = vmatmul.msk.f32.gmra.mxu0 %vm671_vm1, %v3181_v16 }
 0x78b   :  { %v1459_v34 = vsel %vm671_vm1, %v1428_v0, 0.0 }
 0x78c   :  { %1460 = vadd.xlane.f32.xlu2 %v1459_v34 }
 0x790   :  { %v1410_v44 = vpop.f32.mrf.mxu1 }
 0x791   :  { %v1429_v1 = vmul.f32 %v1410_v44, %v3181_v16 }
 0x792   :  { %2209 = vmatmul.msk.f32.gmra.mxu0 %vm671_vm1, %v3188_v54 }
 0x793   :  { %v1462_v36 = vsel %vm671_vm1, %v1429_v1, 0.0 }
 0x794   :  { %1463 = vadd.xlane.f32.xlu1 %v1462_v36 }
 0x798   :  { %v1413_v59 = vpop.f32.mrf.mxu1 }
 0x799   :  { %v1430_v2 = vmul.f32 %v1413_v59, %v3188_v54 }
 0x79a   :  { %2210 = vmatmul.msk.f32.gmra.mxu0 %vm671_vm1, %v3195_v24 }
 0x79b   :  { %v1465_v7 = vsel %vm671_vm1, %v1430_v2, 0.0 }
 0x79c   :  { %1466 = vadd.xlane.f32.xlu1 %v1465_v7 }
 0x7a0   :  { %v1416_v6 = vpop.f32.mrf.mxu1 }
 0x7a1   :  { %v1431_v9 = vmul.f32 %v1416_v6, %v3195_v24 }
 0x7a3   :  { %v1468_v12 = vsel %vm671_vm1, %v1431_v9, 0.0 }
 0x7a4   :  { %1469 = vadd.xlane.f32.xlu2 %v1468_v12 }
 0x7b7   :  { %v1311_v13 = vpop.f32.mrf.mxu0  ;;  %v1434_v14 = vpop.xlane.xlu0 %1433 }
 0x7b8   :  { %v3251_v57 = vmul.f32 0.0078125, %v1311_v13  ;;  %v1471_v15 = vmul.f32 0.0078125, %v1434_v14 }
 0x7ba   :  { %v1484_v25 = vmul.f32 %v3251_v57, %v3251_v57 }
 0x7bc   :  { %v1497_v26 = vsub.f32 %v1471_v15, %v1484_v25 }
 0x7be   :  { %v1510_v37 = vadd.f32 1e-05, %v1497_v26 }
 0x7bf   :  { %v1314_v27 = vpop.f32.mrf.mxu0  ;;  %v1437_v29 = vpop.xlane.xlu2 %1436 }
 0x7c0   :  { %2396 = vrsqrt.f32 %v1510_v37  ;;  %v3255_v33 = vmul.f32 0.0078125, %v1314_v27  ;;  %v1472_v18 = vmul.f32 0.0078125, %v1437_v29  ;;  %vm1529_vm7 = vweird.f32 %v1510_v37 }
 0x7c2   :  { %v1485_v8 = vmul.f32 %v3255_v33, %v3255_v33 }
 0x7c4   :  { %v1498_v4 = vsub.f32 %v1472_v18, %v1485_v8 }
 0x7c6   :  { %v2397_v10 = vpop.eup %2396  ;;  %v1511_v46 = vadd.f32 1e-05, %v1498_v4 }
 0x7c7   :  { %v1524_v43 = vmul.f32 %v2397_v10, %v1510_v37  ;;  %v1317_v30 = vpop.f32.mrf.mxu0  ;;  %v1440_v28 = vpop.xlane.xlu1 %1439  ;;  %vm1530_vm6 = vweird.f32 %v2397_v10 }
 0x7c8   :  { %2398 = vrsqrt.f32 %v1511_v46  ;;  %v3259_v35 = vmul.f32 0.0078125, %v1317_v30  ;;  %v1473_v39 = vmul.f32 0.0078125, %v1440_v28  ;;  %vm1531_vm8 = vmor %vm1529_vm7, %vm1530_vm6  ;;  %vm1539_vm9 = vweird.f32 %v1511_v46 }
 0x7c9   :  { %v1525_v60 = vmul.f32 %v2397_v10, %v1524_v43 }
 0x7ca   :  { %v1486_v31 = vmul.f32 %v3259_v35, %v3259_v35 }
 0x7cb   :  { %v1526_v40 = vmul.f32 0.5, %v1525_v60 }
 0x7cc   :  { %v1499_v42 = vsub.f32 %v1473_v39, %v1486_v31 }
 0x7cd   :  { %v1527_v3 = vsub.f32 1.5, %v1526_v40 }
 0x7ce   :  { %v2399_v41 = vpop.eup %2398  ;;  %v1512_v32 = vadd.f32 1e-05, %v1499_v42 }
 0x7cf   :  { %v1534_v5 = vmul.f32 %v2399_v41, %v1511_v46  ;;  %v1320_v45 = vpop.f32.mrf.mxu0  ;;  %v1443_v47 = vpop.xlane.xlu0 %1442  ;;  %v1528_v19 = vmul.f32 %v2397_v10, %v1527_v3  ;;  %vm1540_vm10 = vweird.f32 %v2399_v41 }
 0x7d0   :  { %v3263_v48 = vmul.f32 0.0078125, %v1320_v45  ;;  %v1474_v50 = vmul.f32 0.0078125, %v1443_v47  ;;  %2400 = vrsqrt.f32 %v1512_v32  ;;  %vm1541_vm11 = vmor %vm1539_vm9, %vm1540_vm10  ;;  %vm1549_vm12 = vweird.f32 %v1512_v32 }
 0x7d1   :  { %v1532_v52 = vsel %vm1531_vm8, %v2397_v10, %v1528_v19  ;;  %v1535_v20 = vmul.f32 %v2399_v41, %v1534_v5 }
 0x7d2   :  { %v1487_v53 = vmul.f32 %v3263_v48, %v3263_v48  ;;  %1666 = vrot.lane.b32.xlu0 %v1532_v52, %s2428_s23 }
 0x7d3   :  { %v1536_v49 = vmul.f32 0.5, %v1535_v20 }
 0x7d4   :  { %v1500_v62 = vsub.f32 %v1474_v50, %v1487_v53 }
 0x7d5   :  { %v1537_v0 = vsub.f32 1.5, %v1536_v49 }
 0x7d6   :  { %v2401_v38 = vpop.eup %2400  ;;  %v1513_v34 = vadd.f32 1e-05, %v1500_v62 }
 0x7d7   :  { %v1323_v63 = vpop.f32.mrf.mxu0  ;;  %v1446_v44 = vpop.xlane.xlu2 %1445  ;;  %v1544_v1 = vmul.f32 %v2401_v38, %v1512_v32  ;;  %v1538_v36 = vmul.f32 %v2399_v41, %v1537_v0  ;;  %vm1550_vm13 = vweird.f32 %v2401_v38 }
 0x7d8   :  { %2402 = vrsqrt.f32 %v1513_v34  ;;  %v3268_v59 = vmul.f32 0.0078125, %v1323_v63  ;;  %v1475_v2 = vmul.f32 0.0078125, %v1446_v44  ;;  %vm1551_vm14 = vmor %vm1549_vm12, %vm1550_vm13  ;;  %vm1559_vm15 = vweird.f32 %v1513_v34 }
 0x7d9   :  { %v1542_v7 = vsel %vm1541_vm11, %v2399_v41, %v1538_v36  ;;  %v1545_v9 = vmul.f32 %v2401_v38, %v1544_v1 }
 0x7da   :  { %v1488_v6 = vmul.f32 %v3268_v59, %v3268_v59  ;;  %1668 = vrot.lane.b32.xlu1 %v1542_v7, %s2428_s23 }
 0x7db   :  { %v1546_v13 = vmul.f32 0.5, %v1545_v9 }
 0x7dc   :  { %v1501_v12 = vsub.f32 %v1475_v2, %v1488_v6 }
 0x7dd   :  { %v1547_v25 = vsub.f32 1.5, %v1546_v13 }
 0x7de   :  { %v2403_v14 = vpop.eup %2402  ;;  %v1514_v15 = vadd.f32 1e-05, %v1501_v12 }
 0x7df   :  { %v1554_v26 = vmul.f32 %v2403_v14, %v1513_v34  ;;  %v1326_v37 = vpop.f32.mrf.mxu0  ;;  %v1449_v27 = vpop.xlane.xlu1 %1448  ;;  %v1548_v4 = vmul.f32 %v2401_v38, %v1547_v25  ;;  %vm1560_vm0 = vweird.f32 %v2403_v14 }
 0x7e0   :  { %2404 = vrsqrt.f32 %v1514_v15  ;;  %v3273_v29 = vmul.f32 0.0078125, %v1326_v37  ;;  %v1476_v18 = vmul.f32 0.0078125, %v1449_v27  ;;  %vm1561_vm2 = vmor %vm1559_vm15, %vm1560_vm0  ;;  %vm1569_vm3 = vweird.f32 %v1514_v15 }
 0x7e1   :  { %v1555_v8 = vmul.f32 %v2403_v14, %v1554_v26  ;;  %v1552_v43 = vsel %vm1551_vm14, %v2401_v38, %v1548_v4 }
 0x7e2   :  { %v1489_v10 = vmul.f32 %v3273_v29, %v3273_v29  ;;  %1670 = vrot.lane.b32.xlu2 %v1552_v43, %s2428_s23 }
 0x7e3   :  { %v1556_v46 = vmul.f32 0.5, %v1555_v8 }
 0x7e4   :  { %v1502_v30 = vsub.f32 %v1476_v18, %v1489_v10 }
 0x7e5   :  { %v1557_v28 = vsub.f32 1.5, %v1556_v46 }
 0x7e6   :  { %v2405_v39 = vpop.eup %2404  ;;  %v1515_v60 = vadd.f32 1e-05, %v1502_v30 }
 0x7e7   :  { %v1564_v31 = vmul.f32 %v2405_v39, %v1514_v15  ;;  %v1329_v40 = vpop.f32.mrf.mxu0  ;;  %v1558_v42 = vmul.f32 %v2403_v14, %v1557_v28  ;;  %v1452_v3 = vpop.xlane.xlu0 %1451  ;;  %vm1570_vm4 = vweird.f32 %v2405_v39 }
 0x7e8   :  { %2406 = vrsqrt.f32 %v1515_v60  ;;  %v3278_v41 = vmul.f32 0.0078125, %v1329_v40  ;;  %v1477_v32 = vmul.f32 0.0078125, %v1452_v3  ;;  %vm1571_vm6 = vmor %vm1569_vm3, %vm1570_vm4  ;;  %vm1579_vm7 = vweird.f32 %v1515_v60 }
 0x7e9   :  { %v1562_v5 = vsel %vm1561_vm2, %v2403_v14, %v1558_v42  ;;  %v1565_v45 = vmul.f32 %v2405_v39, %v1564_v31 }
 0x7ea   :  { %v1490_v47 = vmul.f32 %v3278_v41, %v3278_v41  ;;  %1672 = vrot.lane.b32.xlu0 %v1562_v5, %s2428_s23 }
 0x7eb   :  { %v1566_v19 = vmul.f32 0.5, %v1565_v45 }
 0x7ec   :  { %v1503_v50 = vsub.f32 %v1477_v32, %v1490_v47 }
 0x7ed   :  { %v1567_v52 = vsub.f32 1.5, %v1566_v19 }
 0x7ee   :  { %v2407_v20 = vpop.eup %2406  ;;  %v1516_v53 = vadd.f32 1e-05, %v1503_v50 }
 0x7ef   :  { %v1574_v49 = vmul.f32 %v2407_v20, %v1515_v60  ;;  %v1332_v62 = vpop.f32.mrf.mxu0  ;;  %v1568_v0 = vmul.f32 %v2405_v39, %v1567_v52  ;;  %vm1580_vm8 = vweird.f32 %v2407_v20  ;;  %v1455_v4 = vpop.xlane.xlu2 %1454 }
 0x7f0   :  { %2408 = vrsqrt.f32 %v1516_v53  ;;  %vm1581_vm9 = vmor %vm1579_vm7, %vm1580_vm8  ;;  %vm1589_vm10 = vweird.f32 %v1516_v53 }
 0x7f1   :  { %v1572_v38 = vsel %vm1571_vm6, %v2405_v39, %v1568_v0  ;;  %v1575_v34 = vmul.f32 %v2407_v20, %v1574_v49 }
 0x7f2   :  { %1674 = vrot.lane.b32.xlu0 %v1572_v38, %s2428_s23 }
 0x7f3   :  { %v1576_v63 = vmul.f32 0.5, %v1575_v34 }
 0x7f5   :  { %v1577_v44 = vsub.f32 1.5, %v1576_v63 }
 0x7f6   :  { %v2409_v1 = vpop.eup %2408 }
 0x7f7   :  { %v3284_v36 = vpop.f32.mrf.mxu0  ;;  %v1578_v2 = vmul.f32 %v2407_v20, %v1577_v44  ;;  %v1584_v6 = vmul.f32 %v2409_v1, %v1516_v53  ;;  %vm1590_vm11 = vweird.f32 %v2409_v1  ;;  %v3302_v44 = vmul.f32 0.0078125, %v1332_v62 }
 0x7f8   :  { %vm1591_vm12 = vmor %vm1589_vm10, %vm1590_vm11 }
 0x7f9   :  { %v1582_v7 = vsel %vm1581_vm9, %v2407_v20, %v1578_v2  ;;  %v1585_v9 = vmul.f32 %v2409_v1, %v1584_v6  ;;  %v1491_v6 = vmul.f32 %v3302_v44, %v3302_v44 }
 0x7fa   :  { %1676 = vrot.lane.b32.xlu1 %v1582_v7, %s2428_s23 }
 0x7fb   :  { %v1586_v13 = vmul.f32 0.5, %v1585_v9  ;;  %v1478_v9 = vmul.f32 0.0078125, %v1455_v4 }
 0x7fd   :  { %v1587_v14 = vsub.f32 1.5, %v1586_v13 }
 0x7ff   :  { %v3287_v12 = vpop.f32.mrf.mxu0  ;;  %v1588_v15 = vmul.f32 %v2409_v1, %v1587_v14  ;;  %v1461_v31 = vpop.xlane.xlu2 %1460  ;;  %v2438_v14 = vmov 48  }
 0x800   :  { %2330 = vset.pattern.permute.xlu2 %v2438_v14  ;;  %2331 = vset.pattern.permute.xlu1 %v2438_v14 }
 0x801   :  { %v1592_v25 = vsel %vm1591_vm12, %v2409_v1, %v1588_v15  ;;  %2332 = vset.pattern.permute.xlu0 %v2438_v14 }
 0x802   :  { %1678 = vrot.lane.b32.xlu0 %v1592_v25, %s2428_s23 }
 0x807   :  { %v1341_v26 = vpop.f32.mrf.mxu0  ;;  %v1464_v37 = vpop.xlane.xlu1 %1463 }
 0x808   :  { %v3290_v27 = vmul.f32 0.0078125, %v1341_v26  ;;  %v1481_v18 = vmul.f32 0.0078125, %v1464_v37  ;;  %v3308_v26 = vmul.f32 0.0078125, %v3284_v36  ;;  %v1504_v37 = vsub.f32 %v1478_v9, %v1491_v6 }
 0x809   :  { %v3314_v36 = vmul.f32 0.0078125, %v3287_v12 }
 0x80a   :  { %v1494_v8 = vmul.f32 %v3290_v27, %v3290_v27  ;;  %v1492_v4 = vmul.f32 %v3308_v26, %v3308_v26 }
 0x80c   :  { %v1507_v10 = vsub.f32 %v1481_v18, %v1494_v8  ;;  %v1458_v8 = vpop.xlane.xlu0 %1457 }
 0x80e   :  { %v1520_v46 = vadd.f32 1e-05, %v1507_v10 }
 0x80f   :  { %v1344_v43 = vpop.f32.mrf.mxu0  ;;  %v1467_v30 = vpop.xlane.xlu1 %1466 }
 0x810   :  { %2410 = vrsqrt.f32 %v1520_v46  ;;  %v3294_v28 = vmul.f32 0.0078125, %v1344_v43  ;;  %v1482_v39 = vmul.f32 0.0078125, %v1467_v30  ;;  %vm1629_vm13 = vweird.f32 %v1520_v46 }
 0x811   :  { %v1517_v43 = vadd.f32 1e-05, %v1504_v37  ;;  %v1479_v30 = vmul.f32 0.0078125, %v1458_v8 }
 0x812   :  { %v1495_v60 = vmul.f32 %v3294_v28, %v3294_v28 }
 0x813   :  { %vm1599_vm8 = vweird.f32 %v1517_v43 }
 0x814   :  { %v1508_v40 = vsub.f32 %v1482_v39, %v1495_v60 }
 0x816   :  { %v2411_v42 = vpop.eup %2410  ;;  %v1521_v3 = vadd.f32 1e-05, %v1508_v40  ;;  %v1505_v40 = vsub.f32 %v1479_v30, %v1492_v4 }
 0x817   :  { %v1624_v32 = vmul.f32 %v2411_v42, %v1520_v46  ;;  %v1347_v5 = vpop.f32.mrf.mxu0  ;;  %v1470_v50 = vpop.xlane.xlu2 %1469  ;;  %vm1630_vm14 = vweird.f32 %v2411_v42 }
 0x818   :  { %2412 = vrsqrt.f32 %v1521_v3  ;;  %v3298_v45 = vmul.f32 0.0078125, %v1347_v5  ;;  %v1483_v20 = vmul.f32 0.0078125, %v1470_v50  ;;  %vm1631_vm15 = vmor %vm1629_vm13, %vm1630_vm14  ;;  %vm1639_vm0 = vweird.f32 %v1521_v3 }
 0x819   :  { %v1625_v47 = vmul.f32 %v2411_v42, %v1624_v32  ;;  %v1480_v32 = vmul.f32 0.0078125, %v1461_v31  ;;  %v1518_v5 = vadd.f32 1e-05, %v1505_v40 }
 0x81a   :  { %v1496_v19 = vmul.f32 %v3298_v45, %v3298_v45 }
 0x81b   :  { %v1626_v52 = vmul.f32 0.5, %v1625_v47  ;;  %vm1609_vm11 = vweird.f32 %v1518_v5 }
 0x81c   :  { %v1509_v49 = vsub.f32 %v1483_v20, %v1496_v19 }
 0x81d   :  { %v1627_v53 = vsub.f32 1.5, %v1626_v52 }
 0x81e   :  { %v2413_v0 = vpop.eup %2412  ;;  %v1522_v63 = vadd.f32 1e-05, %v1509_v49 }
 0x81f   :  { %v1634_v38 = vmul.f32 %v2413_v0, %v1521_v3  ;;  %v1628_v34 = vmul.f32 %v2411_v42, %v1627_v53  ;;  %vm1640_vm2 = vweird.f32 %v2413_v0  ;;  %v1493_v3 = vmul.f32 %v3314_v36, %v3314_v36 }
 0x820   :  { %2414 = vrsqrt.f32 %v1522_v63  ;;  %vm1641_vm3 = vmor %vm1639_vm0, %vm1640_vm2  ;;  %vm1649_vm4 = vweird.f32 %v1522_v63 }
 0x821   :  { %v1632_v1 = vsel %vm1631_vm15, %v2411_v42, %v1628_v34  ;;  %v1635_v2 = vmul.f32 %v2413_v0, %v1634_v38  ;;  %2416 = vrsqrt.f32 %v1517_v43  ;;  %v1506_v19 = vsub.f32 %v1480_v32, %v1493_v3 }
 0x822   :  { %1686 = vrot.lane.b32.xlu0 %v1632_v1, %s2428_s23  ;;  %2418 = vrsqrt.f32 %v1518_v5 }
 0x823   :  { %v1636_v7 = vmul.f32 0.5, %v1635_v2  ;;  %v1519_v52 = vadd.f32 1e-05, %v1506_v19 }
 0x825   :  { %v1637_v13 = vsub.f32 1.5, %v1636_v7  ;;  %2420 = vrsqrt.f32 %v1519_v52  ;;  %vm1619_vm14 = vweird.f32 %v1519_v52 }
 0x826   :  { %v2415_v15 = vpop.eup %2414 }
 0x827   :  { %v1638_v62 = vmul.f32 %v2413_v0, %v1637_v13  ;;  %v1644_v25 = vmul.f32 %v2415_v15, %v1522_v63  ;;  %vm1650_vm6 = vweird.f32 %v2415_v15  ;;  %v2417_v47 = vpop.eup %2416 }
 0x828   :  { %vm1651_vm7 = vmor %vm1649_vm4, %vm1650_vm6  ;;  %v1594_v50 = vmul.f32 %v2417_v47, %v1517_v43  ;;  %v2419_v53 = vpop.eup %2418  ;;  %vm1600_vm9 = vweird.f32 %v2417_v47 }
 0x829   :  { %v1642_v18 = vsel %vm1641_vm3, %v2413_v0, %v1638_v62  ;;  %v1645_v10 = vmul.f32 %v2415_v15, %v1644_v25  ;;  %v1604_v12 = vmul.f32 %v2419_v53, %v1518_v5  ;;  %vm1601_vm10 = vmor %vm1599_vm8, %vm1600_vm9  ;;  %vm1610_vm12 = vweird.f32 %v2419_v53 }
 0x82a   :  { %1688 = vrot.lane.b32.xlu0 %v1642_v18, %s2428_s23  ;;  %v1595_v20 = vmul.f32 %v2417_v47, %v1594_v50  ;;  %vm1611_vm13 = vmor %vm1609_vm11, %vm1610_vm12 }
 0x82b   :  { %v1646_v46 = vmul.f32 0.5, %v1645_v10  ;;  %v1605_v63 = vmul.f32 %v2419_v53, %v1604_v12  ;;  %v2421_v1 = vpop.eup %2420 }
 0x82c   :  { %v1596_v49 = vmul.f32 0.5, %v1595_v20  ;;  %v1614_v31 = vmul.f32 %v2421_v1, %v1519_v52  ;;  %vm1620_vm15 = vweird.f32 %v2421_v1 }
 0x82d   :  { %v1647_v39 = vsub.f32 1.5, %v1646_v46  ;;  %v1606_v7 = vmul.f32 0.5, %v1605_v63  ;;  %vm1621_vm0 = vmor %vm1619_vm14, %vm1620_vm15 }
 0x82e   :  { %v1597_v34 = vsub.f32 1.5, %v1596_v49 }
 0x82f   :  { %v1648_v60 = vmul.f32 %v2415_v15, %v1647_v39  ;;  %v1607_v14 = vsub.f32 1.5, %v1606_v7 }
 0x830   :  { %v1598_v2 = vmul.f32 %v2417_v47, %v1597_v34 }
 0x831   :  { %v1652_v42 = vsel %vm1651_vm7, %v2415_v15, %v1648_v60  ;;  %v1615_v15 = vmul.f32 %v2421_v1, %v1614_v31  ;;  %v1608_v25 = vmul.f32 %v2419_v53, %v1607_v14 }
 0x832   :  { %1690 = vrot.lane.b32.xlu0 %v1652_v42, %s2428_s23  ;;  %v1602_v13 = vsel %vm1601_vm10, %v2417_v47, %v1598_v2 }
 0x833   :  { %v1616_v37 = vmul.f32 0.5, %v1615_v15  ;;  %v1612_v8 = vsel %vm1611_vm13, %v2419_v53, %v1608_v25 }
 0x835   :  { %v1617_v10 = vsub.f32 1.5, %v1616_v37 }
 0x837   :  { %v1618_v46 = vmul.f32 %v2421_v1, %v1617_v10 }
 0x839   :  { %v1622_v30 = vsel %vm1621_vm0, %v2421_v1, %v1618_v46 }
 0x83c   :  { %v1671_v62 = vpop.permute.xlu2 %1670 }
 0x83d   :  { %v1707_v18 = vmul.f32 %v1671_v62, %v3125_v56 }
 0x844   :  { %v1667_v0 = vpop.permute.xlu0 %1666 }
 0x845   :  { %v1705_v38 = vmul.f32 %v1667_v0, %v3111_v55 }
 0x847   :  { %1849 = vperm.xlu2 %2330, %v1705_v38  }
 0x84c   :  { %v1669_v6 = vpop.permute.xlu1 %1668 }
 0x84d   :  { %v3321_v9 = vmul.f32 %v1669_v6, %v3118_v17 }
 0x84f   :  { %1853 = vperm.xlu1 %2331, %v3321_v9   ;;  %1680 = vrot.lane.b32.xlu2 %v1602_v13, %s2428_s23 }
 0x857   :  { %1682 = vrot.lane.b32.xlu2 %v1612_v8, %s2428_s23  ;;  %1857 = vperm.xlu1 %2331, %v1707_v18  }
 0x85c   :  { %v1673_v4 = vpop.permute.xlu0 %1672 }
 0x85d   :  { %v1708_v43 = vmul.f32 %v1673_v4, %v3132_v61 }
 0x85f   :  { %1684 = vrot.lane.b32.xlu2 %v1622_v30, %s2428_s23  ;;  %1861 = vperm.xlu1 %2331, %v1708_v43  }
 0x864   :  { %v1675_v39 = vpop.permute.xlu0 %1674 }
 0x865   :  { %v1709_v60 = vmul.f32 %v1675_v39, %v3139_v11 }
 0x867   :  { %1865 = vperm.xlu1 %2331, %v1709_v60  }
 0x86c   :  { %v1677_v40 = vpop.permute.xlu1 %1676 }
 0x86d   :  { %v1710_v42 = vmul.f32 %v1677_v40, %v3146_v21 }
 0x86f   :  { %1869 = vperm.xlu2 %2330, %v1710_v42  }
 0x874   :  { %v1679_v3 = vpop.permute.xlu0 %1678 }
 0x875   :  { %v1711_v32 = vmul.f32 %v1679_v3, %v3153_v22 }
 0x877   :  { %1873 = vperm.xlu0 %2332, %v1711_v32  }
 0x894   :  { %v1687_v5 = vpop.permute.xlu0 %1686 }
 0x895   :  { %v1715_v47 = vmul.f32 %v1687_v5, %v3181_v16 }
 0x897   :  { %1889 = vperm.xlu2 %2330, %v1715_v47  }
 0x89c   :  { %v1689_v19 = vpop.permute.xlu0 %1688 }
 0x89d   :  { %v1716_v50 = vmul.f32 %v1689_v19, %v3188_v54 }
 0x89f   :  { %1893 = vperm.xlu2 %2330, %v1716_v50  }
 0x8a1   :  { %v1850_v52 = vpop.permute.xlu2 %1849 }
 0x8a2   :  { %v1900_v20 = vmul.f32 %v1850_v52, %v3111_v55 }
 0x8a4   :  { %2224 = vmatmul.msk.f32.vlgmr.msra.gmra.mxu2 %vm671_vm1, %v1900_v20  ;;  %v1691_v34 = vpop.permute.xlu0 %1690 }
 0x8a5   :  { %v1717_v63 = vmul.f32 %v1691_v34, %v3195_v24 }
 0x8a7   :  { %1731 = vrot.lane.b32.xlu2 %v1705_v38, %s2429_s0 }
 0x8a9   :  { %v1681_v53 = vpop.permute.xlu2 %1680 }
 0x8aa   :  { %v1712_v12 = vmul.f32 %v1681_v53, %v3160_v23 }
 0x8ac   :  { %1877 = vperm.xlu1 %2331, %v1712_v12  }
 0x8af   :  { %1737 = vrot.lane.b32.xlu2 %v1708_v43, %s2429_s0 }
 0x8b1   :  { %v1683_v49 = vpop.permute.xlu2 %1682 }
 0x8b2   :  { %v1713_v0 = vmul.f32 %v1683_v49, %v3167_v58 }
 0x8b4   :  { %1881 = vperm.xlu1 %2331, %v1713_v0  }
 0x8b7   :  { %1743 = vrot.lane.b32.xlu2 %v1711_v32, %s2429_s0 }
 0x8b9   :  { %v1685_v1 = vpop.permute.xlu2 %1684 }
 0x8ba   :  { %v1714_v31 = vmul.f32 %v1685_v1, %v3174_v51 }
 0x8bc   :  { %1897 = vperm.xlu1 %2331, %v1717_v63   ;;  %1885 = vperm.xlu0 %2332, %v1714_v31  }
 0x8bf   :  { %1749 = vrot.lane.b32.xlu2 %v1714_v31, %s2429_s0 }
 0x8c1   :  { %v1854_v38 = vpop.permute.xlu1 %1853 }
 0x8c2   :  { %v1901_v2 = vmul.f32 %v1854_v38, %v3118_v17 }
 0x8c4   :  { %2225 = vmatmul.msk.f32.gmra.mxu2 %vm671_vm1, %v1901_v2  ;;  %1735 = vrot.lane.b32.xlu1 %v1707_v18, %s2429_s0 }
 0x8c5   :  { %1733 = vrot.lane.b32.xlu0 %v3321_v9, %s2429_s0 }
 0x8c7   :  { %1755 = vrot.lane.b32.xlu2 %v1717_v63, %s2429_s0 }
 0x8c9   :  { %v1858_v7 = vpop.permute.xlu1 %1857  ;;  %v1870_v62 = vpop.permute.xlu2 %1869 }
 0x8ca   :  { %v1902_v6 = vmul.f32 %v1858_v7, %v3125_v56  ;;  %v1905_v25 = vmul.f32 %v1870_v62, %v3146_v21 }
 0x8cc   :  { %2226 = vmatmul.msk.f32.gmra.mxu2 %vm671_vm1, %v1902_v6  ;;  %1741 = vrot.lane.b32.xlu1 %v1710_v42, %s2429_s0  ;;  %v2440_v6 = vmov 49  }
 0x8cd   :  { %1739 = vrot.lane.b32.xlu0 %v1709_v60, %s2429_s0  ;;  %2333 = vset.pattern.permute.xlu1 %v2440_v6 }
 0x8ce   :  { %2335 = vset.pattern.permute.xlu0 %v2440_v6  ;;  %2334 = vset.pattern.permute.xlu2 %v2440_v6 }
 0x8d1   :  { %v1862_v13 = vpop.permute.xlu1 %1861 }
 0x8d2   :  { %v1903_v14 = vmul.f32 %v1862_v13, %v3132_v61 }
 0x8d4   :  { %2227 = vmatmul.msk.f32.gmra.mxu2 %vm671_vm1, %v1903_v14  ;;  %1747 = vrot.lane.b32.xlu1 %v1713_v0, %s2429_s0 }
 0x8d5   :  { %1745 = vrot.lane.b32.xlu0 %v1712_v12, %s2429_s0 }
 0x8d9   :  { %v1866_v9 = vpop.permute.xlu1 %1865 }
 0x8da   :  { %v1904_v15 = vmul.f32 %v1866_v9, %v3139_v11 }
 0x8dc   :  { %2228 = vmatmul.msk.f32.gmra.mxu2 %vm671_vm1, %v1904_v15  ;;  %1753 = vrot.lane.b32.xlu1 %v1716_v50, %s2429_s0 }
 0x8dd   :  { %1751 = vrot.lane.b32.xlu0 %v1715_v47, %s2429_s0 }
 0x8e4   :  { %2229 = vmatmul.msk.f32.gmra.mxu2 %vm671_vm1, %v1905_v25 }
 0x8e9   :  { %v1874_v8 = vpop.permute.xlu0 %1873 }
 0x8ea   :  { %v1906_v10 = vmul.f32 %v1874_v8, %v3153_v22 }
 0x8ec   :  { %2230 = vmatmul.msk.f32.gmra.mxu2 %vm671_vm1, %v1906_v10 }
 0x8f1   :  { %v1890_v37 = vpop.permute.xlu2 %1889 }
 0x8f2   :  { %v1910_v18 = vmul.f32 %v1890_v37, %v3181_v16 }
 0x8f4   :  { %2234 = vmatmul.msk.f32.vlgmr.msrb.gmra.mxu3 %vm671_vm1, %v1910_v18 }
 0x8f9   :  { %v1894_v46 = vpop.permute.xlu2 %1893 }
 0x8fa   :  { %v1911_v4 = vmul.f32 %v1894_v46, %v3188_v54 }
 0x8fc   :  { %2235 = vmatmul.msk.f32.gmra.mxu3 %vm671_vm1, %v1911_v4 }
 0x901   :  { %v1732_v43 = vpop.permute.xlu2 %1731 }
 0x902   :  { %v1770_v30 = vmul.f32 %v1732_v43, %v3251_v57 }
 0x904   :  { %1796 = vrot.lane.b32.xlu0 %v1770_v30, %s2439_s5 }
 0x909   :  { %v1738_v39 = vpop.permute.xlu2 %1737 }
 0x90a   :  { %v1773_v60 = vmul.f32 %v1738_v39, %v3263_v48 }
 0x90c   :  { %1802 = vrot.lane.b32.xlu0 %v1773_v60, %s2439_s5 }
 0x911   :  { %v1744_v40 = vpop.permute.xlu2 %1743 }
 0x912   :  { %v1776_v42 = vmul.f32 %v1744_v40, %v3278_v41 }
 0x914   :  { %1808 = vrot.lane.b32.xlu0 %v1776_v42, %s2439_s5 }
 0x919   :  { %v1750_v3 = vpop.permute.xlu2 %1749 }
 0x91a   :  { %v1779_v32 = vmul.f32 %v1750_v3, %v3314_v36 }
 0x91c   :  { %1814 = vrot.lane.b32.xlu0 %v1779_v32, %s2439_s5 }
 0x91e   :  { %v1878_v5 = vpop.permute.xlu1 %1877 }
 0x91f   :  { %v1907_v57 = vmul.f32 %v1878_v5, %v3160_v23 }
 0x921   :  { %v1756_v47 = vpop.permute.xlu2 %1755  ;;  %2231 = vmatmul.msk.f32.gmra.mxu2 %vm671_vm1, %v1907_v57 }
 0x922   :  { %v1782_v48 = vmul.f32 %v1756_v47, %v3298_v45 }
 0x924   :  { %1820 = vrot.lane.b32.xlu0 %v1782_v48, %s2439_s5 }
 0x926   :  { %v1882_v19 = vpop.permute.xlu1 %1881 }
 0x927   :  { %v1908_v41 = vmul.f32 %v1882_v19, %v3167_v58  ;;  %v2034_v39 = vpop.f32.mrf.mxu2 }
 0x929   :  { %2232 = vmatmul.msk.f32.gmra.mxu2 %vm671_vm1, %v1908_v41 }
 0x92e   :  { %v1898_v50 = vpop.permute.xlu1 %1897  ;;  %v1886_v52 = vpop.permute.xlu0 %1885 }
 0x92f   :  { %v1912_v36 = vmul.f32 %v1898_v50, %v3195_v24  ;;  %v1909_v20 = vmul.f32 %v1886_v52, %v3174_v51 }
 0x931   :  { %2233 = vmatmul.msk.f32.gmra.mxu2 %vm671_vm1, %v1909_v20  ;;  %2236 = vmatmul.msk.f32.gmra.mxu3 %vm671_vm1, %v1912_v36 }
 0x936   :  { %v1736_v53 = vpop.permute.xlu1 %1735 }
 0x937   :  { %v1772_v45 = vmul.f32 %v1736_v53, %v3259_v35  ;;  %v1734_v12 = vpop.permute.xlu0 %1733 }
 0x938   :  { %v1771_v49 = vmul.f32 %v1734_v12, %v3255_v33 }
 0x939   :  { %1800 = vrot.lane.b32.xlu2 %v1772_v45, %s2439_s5 }
 0x93a   :  { %1798 = vrot.lane.b32.xlu1 %v1771_v49, %s2439_s5 }
 0x93e   :  { %v1742_v0 = vpop.permute.xlu1 %1741 }
 0x93f   :  { %v1775_v34 = vmul.f32 %v1742_v0, %v3273_v29  ;;  %v1740_v63 = vpop.permute.xlu0 %1739 }
 0x940   :  { %v1774_v1 = vmul.f32 %v1740_v63, %v3268_v59 }
 0x941   :  { %1806 = vrot.lane.b32.xlu2 %v1775_v34, %s2439_s5 }
 0x942   :  { %1804 = vrot.lane.b32.xlu1 %v1774_v1, %s2439_s5 }
 0x946   :  { %v1748_v31 = vpop.permute.xlu1 %1747 }
 0x947   :  { %v1778_v35 = vmul.f32 %v1748_v31, %v3308_v26  ;;  %v1746_v38 = vpop.permute.xlu0 %1745  ;;  %v2037_v60 = vpop.f32.mrf.mxu2 }
 0x948   :  { %v1777_v33 = vmul.f32 %v1746_v38, %v3302_v44 }
 0x949   :  { %1812 = vrot.lane.b32.xlu2 %v1778_v35, %s2439_s5 }
 0x94a   :  { %1810 = vrot.lane.b32.xlu1 %v1777_v33, %s2439_s5 }
 0x94e   :  { %v1754_v2 = vpop.permute.xlu1 %1753 }
 0x94f   :  { %v1781_v29 = vmul.f32 %v1754_v2, %v3294_v28  ;;  %v1752_v7 = vpop.permute.xlu0 %1751  ;;  %v2040_v40 = vpop.f32.mrf.mxu2 }
 0x950   :  { %v1780_v59 = vmul.f32 %v1752_v7, %v3290_v27 }
 0x951   :  { %1818 = vrot.lane.b32.xlu2 %v1781_v29, %s2439_s5 }
 0x952   :  { %1816 = vrot.lane.b32.xlu1 %v1780_v59, %s2439_s5 }
 0x976   :  { %v1797_v26 = vpop.permute.xlu0 %1796 }
 0x977   :  { %v1835_v44 = vsub.f32 %v3111_v55, %v1797_v26  ;;  %v2064_v20 = vpop.f32.mrf.mxu3 }
 0x979   :  { %1915 = vperm.xlu1 %2333, %v1835_v44  }
 0x97e   :  { %v1803_v13 = vpop.permute.xlu0 %1802 }
 0x97f   :  { %v1838_v14 = vsub.f32 %v3132_v61, %v1803_v13  ;;  %v2067_v34 = vpop.f32.mrf.mxu3 }
 0x981   :  { %1930 = vperm.xlu1 %2333, %v1838_v14  }
 0x986   :  { %v1809_v10 = vpop.permute.xlu0 %1808 }
 0x993   :  { %v1801_v28 = vpop.permute.xlu2 %1800 }
 0x994   :  { %v1837_v9 = vsub.f32 %v3125_v56, %v1801_v28 }
 0x996   :  { %1925 = vperm.xlu0 %2335, %v1837_v9  }
 0x99b   :  { %v1807_v27 = vpop.permute.xlu2 %1806 }
 0x99c   :  { %v1840_v15 = vsub.f32 %v3146_v21, %v1807_v27  ;;  %v1841_v21 = vsub.f32 %v3153_v22, %v1809_v10  ;;  %v2043_v22 = vpop.f32.mrf.mxu2 }
 0x99e   :  { %1940 = vperm.xlu1 %2333, %v1840_v15  }
 0x9a3   :  { %v1813_v62 = vpop.permute.xlu2 %1812 }
 0x9a4   :  { %v1843_v25 = vsub.f32 %v3167_v58, %v1813_v62  ;;  %v1815_v58 = vpop.permute.xlu0 %1814 }
 0x9a6   :  { %1955 = vperm.xlu1 %2333, %v1843_v25  }
 0x9ab   :  { %v1819_v37 = vpop.permute.xlu2 %1818 }
 0x9ac   :  { %v1799_v18 = vpop.permute.xlu1 %1798  ;;  %v1846_v55 = vsub.f32 %v3188_v54, %v1819_v37  ;;  %v1844_v54 = vsub.f32 %v3174_v51, %v1815_v58  ;;  %v1821_v30 = vpop.permute.xlu0 %1820 }
 0x9ad   :  { %v1836_v8 = vsub.f32 %v3118_v17, %v1799_v18  ;;  %v2046_v51 = vpop.f32.mrf.mxu2 }
 0x9ae   :  { %1970 = vperm.xlu1 %2333, %v1846_v55  }
 0x9af   :  { %1920 = vperm.xlu2 %2334, %v1836_v8  }
 0x9b4   :  { %v1805_v61 = vpop.permute.xlu1 %1804  ;;  %v2070_v33 = vpop.f32.mrf.mxu3 }
 0x9b5   :  { %v1839_v56 = vsub.f32 %v3139_v11, %v1805_v61  ;;  %v1847_v11 = vsub.f32 %v3195_v24, %v1821_v30  ;;  %v2049_v24 = vpop.f32.mrf.mxu2 }
 0x9b7   :  { %1935 = vperm.xlu2 %2334, %v1839_v56  }
 0x9bc   :  { %v1811_v46 = vpop.permute.xlu1 %1810 }
 0x9bd   :  { %v1842_v4 = vsub.f32 %v3160_v23, %v1811_v46  ;;  %v2052_v32 = vpop.f32.mrf.mxu2 }
 0x9bf   :  { %1945 = vperm.xlu2 %2334, %v1841_v21   ;;  %1950 = vperm.xlu0 %2335, %v1842_v4  }
 0x9c4   :  { %v1817_v43 = vpop.permute.xlu1 %1816 }
 0x9c5   :  { %v1845_v17 = vsub.f32 %v3181_v16, %v1817_v43  ;;  %v2055_v19 = vpop.f32.mrf.mxu2 }
 0x9c7   :  { %1960 = vperm.xlu2 %2334, %v1844_v54   ;;  %1965 = vperm.xlu0 %2335, %v1845_v17  }
 0x9cd   :  { %v2058_v53 = vpop.f32.mrf.mxu2 }
 0x9cf   :  { %1975 = vperm.xlu2 %2334, %v1847_v11  }
 0x9d5   :  { %v2061_v1 = vpop.f32.mrf.mxu2 }
 0x9eb   :  { %v1916_v42 = vpop.permute.xlu1 %1915 }
 0x9ec   :  { %v2035_v23 = vadd.f32 %v2034_v39, %v1916_v42 }
 0x9ee   :  { %2073 = vst.msk [vmem:[%s3540_s6] sm:$0xff] %vm1043_vm5, %v2035_v23  ;;  %2099 = vrot.lane.b32.xlu0 %v2035_v23, %s2433_s10 }
 0x9f3   :  { %v1931_v16 = vpop.permute.xlu1 %1930 }
 0x9f4   :  { %v2044_v3 = vadd.f32 %v2043_v22, %v1931_v16 }
 0x9f6   :  { %2076 = vst.msk [vmem:[%s3540_s6 + $0x18] sm:$0xff] %vm1043_vm5, %v2044_v3  ;;  %2105 = vrot.lane.b32.xlu0 %v2044_v3, %s2433_s10 }
 0xa08   :  { %v1926_v5 = vpop.permute.xlu0 %1925 }
 0xa09   :  { %v2041_v57 = vadd.f32 %v2040_v40, %v1926_v5  ;;  %v1921_v47 = vpop.permute.xlu2 %1920 }
 0xa0a   :  { %v2038_v48 = vadd.f32 %v2037_v60, %v1921_v47 }
 0xa0b   :  { %2075 = vst.msk [vmem:[%s3540_s6 + $0x10] sm:$0xff] %vm1043_vm5, %v2041_v57  ;;  %2103 = vrot.lane.b32.xlu2 %v2041_v57, %s2433_s10 }
 0xa0c   :  { %2074 = vst.msk [vmem:[%s3540_s6 + $0x8] sm:$0xff] %vm1043_vm5, %v2038_v48  ;;  %2101 = vrot.lane.b32.xlu1 %v2038_v48, %s2433_s10 }
 0xa10   :  { %v1941_v41 = vpop.permute.xlu1 %1940 }
 0xa11   :  { %v2050_v50 = vadd.f32 %v2049_v24, %v1941_v41  ;;  %v1936_v52 = vpop.permute.xlu2 %1935 }
 0xa12   :  { %v2047_v36 = vadd.f32 %v2046_v51, %v1936_v52 }
 0xa13   :  { %2078 = vst.msk [vmem:[%s3540_s6 + $0x28] sm:$0xff] %vm1043_vm5, %v2050_v50  ;;  %2109 = vrot.lane.b32.xlu2 %v2050_v50, %s2433_s10 }
 0xa14   :  { %2077 = vst.msk [vmem:[%s3540_s6 + $0x20] sm:$0xff] %vm1043_vm5, %v2047_v36  ;;  %2107 = vrot.lane.b32.xlu1 %v2047_v36, %s2433_s10 }
 0xa18   :  { %v1956_v45 = vpop.permute.xlu1 %1955 }
 0xa19   :  { %v2059_v12 = vadd.f32 %v2058_v53, %v1956_v45  ;;  %v1946_v49 = vpop.permute.xlu2 %1945 }
 0xa1a   :  { %v2053_v0 = vadd.f32 %v2052_v32, %v1946_v49 }
 0xa1b   :  { %2081 = vst.msk [vmem:[%s3540_s6 + $0x40] sm:$0xff] %vm1043_vm5, %v2059_v12  ;;  %2115 = vrot.lane.b32.xlu2 %v2059_v12, %s2433_s10 }
 0xa1c   :  { %2079 = vst.msk [vmem:[%s3540_s6 + $0x30] sm:$0xff] %vm1043_vm5, %v2053_v0  ;;  %2111 = vrot.lane.b32.xlu0 %v2053_v0, %s2433_s10 }
 0xa20   :  { %v1971_v63 = vpop.permute.xlu1 %1970 }
 0xa21   :  { %v2068_v31 = vadd.f32 %v2067_v34, %v1971_v63  ;;  %v1961_v35 = vpop.permute.xlu2 %1960 }
 0xa22   :  { %v2062_v38 = vadd.f32 %v2061_v1, %v1961_v35 }
 0xa23   :  { %2084 = vst.msk [vmem:[%s3540_s6 + $0x58] sm:$0xff] %vm1043_vm5, %v2068_v31  ;;  %2121 = vrot.lane.b32.xlu2 %v2068_v31, %s2433_s10 }
 0xa24   :  { %2082 = vst.msk [vmem:[%s3540_s6 + $0x48] sm:$0xff] %vm1043_vm5, %v2062_v38  ;;  %2117 = vrot.lane.b32.xlu0 %v2062_v38, %s2433_s10 }
 0xa29   :  { %v1976_v2 = vpop.permute.xlu2 %1975 }
 0xa2a   :  { %v2071_v29 = vadd.f32 %v2070_v33, %v1976_v2 }
 0xa2c   :  { %2085 = vst.msk [vmem:[%s3540_s6 + $0x60] sm:$0xff] %vm1043_vm5, %v2071_v29  ;;  %2123 = vrot.lane.b32.xlu0 %v2071_v29, %s2433_s10 }
 0xa31   :  { %v1951_v7 = vpop.permute.xlu0 %1950 }
 0xa32   :  { %v2056_v59 = vadd.f32 %v2055_v19, %v1951_v7 }
 0xa34   :  { %2080 = vst.msk [vmem:[%s3540_s6 + $0x38] sm:$0xff] %vm1043_vm5, %v2056_v59  ;;  %2113 = vrot.lane.b32.xlu1 %v2056_v59, %s2433_s10 }
 0xa39   :  { %v1966_v6 = vpop.permute.xlu0 %1965 }
 0xa3a   :  { %v2065_v26 = vadd.f32 %v2064_v20, %v1966_v6 }
 0xa3c   :  { %2083 = vst.msk [vmem:[%s3540_s6 + $0x50] sm:$0xff] %vm1043_vm5, %v2065_v26  ;;  %2119 = vrot.lane.b32.xlu1 %v2065_v26, %s2433_s10 }
 0xa60   :  { %v2100_v44 = vpop.permute.xlu0 %2099 }
 0xa61   :  { %2237 = vst.msk [vmem:[%s3540_s6 + $0x68] sm:$0xff] %vm1043_vm5, %v2100_v44 }
 0xa65   :  { %v2104_v13 = vpop.permute.xlu2 %2103 }
 0xa66   :  { %2239 = vst.msk [vmem:[%s3540_s6 + $0x78] sm:$0xff] %vm1043_vm5, %v2104_v13 }
 0xa68   :  { %v2106_v14 = vpop.permute.xlu0 %2105 }
 0xa69   :  { %2240 = vst.msk [vmem:[%s3540_s6 + $0x80] sm:$0xff] %vm1043_vm5, %v2106_v14 }
 0xa6d   :  { %v2110_v28 = vpop.permute.xlu2 %2109 }
 0xa6e   :  { %2242 = vst.msk [vmem:[%s3540_s6 + $0x90] sm:$0xff] %vm1043_vm5, %v2110_v28 }
 0xa75   :  { %v2116_v9 = vpop.permute.xlu2 %2115 }
 0xa76   :  { %2245 = vst.msk [vmem:[%s3540_s6 + $0xa8] sm:$0xff] %vm1043_vm5, %v2116_v9 }
 0xa7d   :  { %v2122_v27 = vpop.permute.xlu2 %2121 }
 0xa7e   :  { %v2102_v15 = vpop.permute.xlu1 %2101  ;;  %2248 = vst.msk [vmem:[%s3540_s6 + $0xc0] sm:$0xff] %vm1043_vm5, %v2122_v27 }
 0xa7f   :  { %2238 = vst.msk [vmem:[%s3540_s6 + $0x70] sm:$0xff] %vm1043_vm5, %v2102_v15 }
 0xa86   :  { %v2108_v62 = vpop.permute.xlu1 %2107 }
 0xa87   :  { %2241 = vst.msk [vmem:[%s3540_s6 + $0x88] sm:$0xff] %vm1043_vm5, %v2108_v62 }
 0xa8e   :  { %v2112_v25 = vpop.permute.xlu0 %2111 }
 0xa8f   :  { %2243 = vst.msk [vmem:[%s3540_s6 + $0x98] sm:$0xff] %vm1043_vm5, %v2112_v25 }
 0xa96   :  { %v2118_v37 = vpop.permute.xlu0 %2117 }
 0xa97   :  { %2246 = vst.msk [vmem:[%s3540_s6 + $0xb0] sm:$0xff] %vm1043_vm5, %v2118_v37 }
 0xa9e   :  { %v2124_v18 = vpop.permute.xlu0 %2123 }
 0xa9f   :  { %2249 = vst.msk [vmem:[%s3540_s6 + $0xc8] sm:$0xff] %vm1043_vm5, %v2124_v18 }
 0xaa6   :  { %v2114_v55 = vpop.permute.xlu1 %2113 }
 0xaa7   :  { %2244 = vst.msk [vmem:[%s3540_s6 + $0xa0] sm:$0xff] %vm1043_vm5, %v2114_v55 }
 0xaae   :  { %v2120_v8 = vpop.permute.xlu1 %2119 }
 0xaaf   :  { %2247 = vst.msk [vmem:[%s3540_s6 + $0xb8] sm:$0xff] %vm1043_vm5, %v2120_v8 }

</bundles_post_ra>
